<compile_context>
chip_gen: v7x
topology: tpu7x:2x2x1
jax: 0.10.0
libtpu: 0.0.40
codegen_flags: <defaults>
</compile_context>

<pallas_src>
import math
import jax
import jax.numpy as jnp
from jax.experimental import pallas as pl
from jax.experimental.pallas import tpu as pltpu


def _round_up(x, m):
    return (x + m - 1) // m * m


# ---------------------------------------------------------------------------
# Kernel
# ---------------------------------------------------------------------------
def make_vae_kernel(latent_pad):
    """Kernel factory; latent_pad is the padded latent width (multiple of 128)."""

    def vae_kernel(x_ref, eps_ref,
                   w_enc_ref, b_enc_ref,
                   w_ml_ref, b_ml_ref,
                   w_d1_ref, b_d1_ref,
                   w_d2_ref, b_d2_ref,
                   recon_ref, ml_ref):
        # ---- encoder: Linear(input, hidden) + ReLU  (bf16 matmul, f32 accumulation) ----
        x = x_ref[...]                                                  # bf16 [TB, D]
        h = jnp.dot(x, w_enc_ref[...],
                    preferred_element_type=jnp.float32) + b_enc_ref[...]
        h = jnp.maximum(h, 0.0)

        # ---- fused fc_mean / fc_logvar: one [hidden, 2*latent] matmul ----
        ml = jnp.dot(h.astype(jnp.bfloat16), w_ml_ref[...],
                     preferred_element_type=jnp.float32) + b_ml_ref[...]
        mean = ml[:, :latent_pad]
        logvar = ml[:, latent_pad:]

        # ---- reparameterize: z = mean + eps * exp(0.5 * logvar)  (f32 elementwise) ----
        # (bf16 exp would be slightly faster on v6e/v7x EUP but is not supported on v5e;
        #  negligible at these dims, so keep f32 everywhere.)
        std = jnp.exp(0.5 * logvar)
        z = mean + eps_ref[...].astype(jnp.float32) * std

        # ---- decoder: Linear(latent, hidden) + ReLU, Linear(hidden, input) + Sigmoid ----
        h2 = jnp.dot(z.astype(jnp.bfloat16), w_d1_ref[...],
                     preferred_element_type=jnp.float32) + b_d1_ref[...]
        h2 = jnp.maximum(h2, 0.0)
        logits = jnp.dot(h2.astype(jnp.bfloat16), w_d2_ref[...],
                         preferred_element_type=jnp.float32) + b_d2_ref[...]
        # sigmoid: exp + approx reciprocal both route to the EUP (VALU slot stays free);
        # clamp because the approx reciprocal can land a hair outside [0, 1].
        recon = pl.reciprocal(1.0 + jnp.exp(-logits), approx=True)
        recon = jnp.clip(recon, 0.0, 1.0)

        # bf16 stores: kernel is memory-bound, recon/ml are the two largest per-step writes.
        recon_ref[...] = recon.astype(recon_ref.dtype)
        ml_ref[...] = ml.astype(ml_ref.dtype)

    return vae_kernel


# ---------------------------------------------------------------------------
# One-time parameter packing (hoisted out of the per-call forward)
# ---------------------------------------------------------------------------
def prepare_params(params):
    """Pad weights to lane-dense (multiple-of-128) shapes, fuse mean/logvar projections into
    one [H, 2L] matrix, and cast matmul operands to bf16.  Do this ONCE and reuse the packed
    pytree for every forward call."""
    input_dim, hidden_dim = params["w_enc"].shape
    latent_dim = params["w_mu"].shape[1]
    D = _round_up(input_dim, 128)
    H = _round_up(hidden_dim, 128)
    L = _round_up(latent_dim, 128)

    def pad2(a, rows, cols):
        return jnp.pad(a, ((0, rows - a.shape[0]), (0, cols - a.shape[1])))

    packed = dict(
        w_enc=pad2(params["w_enc"], D, H).astype(jnp.bfloat16),
        b_enc=pad2(params["b_enc"], 1, H).astype(jnp.float32),
        w_ml=jnp.concatenate([pad2(params["w_mu"], H, L),
                              pad2(params["w_lv"], H, L)], axis=1).astype(jnp.bfloat16),
        b_ml=jnp.concatenate([pad2(params["b_mu"], 1, L),
                              pad2(params["b_lv"], 1, L)], axis=1).astype(jnp.float32),
        w_d1=pad2(params["w_d1"], L, H).astype(jnp.bfloat16),
        b_d1=pad2(params["b_d1"], 1, H).astype(jnp.float32),
        w_d2=pad2(params["w_d2"], H, D).astype(jnp.bfloat16),
        b_d2=pad2(params["b_d2"], 1, D).astype(jnp.float32),
    )
    dims = dict(input_dim=input_dim, hidden_dim=hidden_dim, latent_dim=latent_dim,
                D=D, H=H, L=L)
    return packed, dims


def _choose_batch_tiling(B, tb):
    """Pick (TB, Bp).  Large tiles amortize per-step overhead on single-TC v5e/v6e; an even
    number of grid steps keeps both v7x TensorCores busy under ("parallel",) semantics."""
    Bp = _round_up(max(B, 8), 8)
    if Bp <= 16:
        return Bp, Bp                      # tiny batch -> single step
    n = max(2, pl.cdiv(Bp, tb))            # at least 2 steps so v7x's 2nd TC has work
    n = _round_up(n, 2)                    # even grid length for the 2-TC split
    TB = _round_up(pl.cdiv(Bp, n), 8)
    return TB, TB * n


# ---------------------------------------------------------------------------
# Forward wrapper
# ---------------------------------------------------------------------------
def vae_forward(x, eps, packed, dims, *, tb=256):
    """Full VAE forward in a single Pallas call; weights must come from prepare_params()."""
    B, input_dim = x.shape
    assert input_dim == dims["input_dim"]
    latent_dim = dims["latent_dim"]
    D, H, L = dims["D"], dims["H"], dims["L"]

    TB, Bp = _choose_batch_tiling(B, tb)

    # Per-call work is only: pad x / eps and cast them to bf16 (halves their DMA bytes).
    x_p = jnp.pad(x, ((0, Bp - B), (0, D - input_dim))).astype(jnp.bfloat16)
    eps_p = jnp.pad(eps, ((0, Bp - B), (0, L - latent_dim))).astype(jnp.bfloat16)

    w_args = (packed["w_enc"], packed["b_enc"], packed["w_ml"], packed["b_ml"],
              packed["w_d1"], packed["b_d1"], packed["w_d2"], packed["b_d2"])
    args = (x_p, eps_p) + w_args

    grid = (Bp // TB,)

    def batch_spec(cols):
        return pl.BlockSpec((TB, cols), lambda i: (i, 0))

    def const_spec(a, mode):
        # Constant index_map -> block stays resident in VMEM across all batch steps.
        return pl.BlockSpec(a.shape, lambda i: (0, 0), pipeline_mode=mode)

    out_specs = (batch_spec(D), batch_spec(2 * L))
    out_shapes = (
        jax.ShapeDtypeStruct((Bp, D), jnp.bfloat16),      # reconstructed (padded, bf16)
        jax.ShapeDtypeStruct((Bp, 2 * L), jnp.bfloat16),  # packed [mean | logvar] (padded)
    )

    # Advisory cost estimate (5 logical matmuls; exp for std + sigmoid + approx recip).
    flops = 2 * Bp * (D * H + H * 2 * L + L * H + H * D)
    transcendentals = Bp * (L + 2 * D)
    bytes_accessed = (sum(int(a.size) * a.dtype.itemsize for a in args)
                      + Bp * D * 2 + Bp * 2 * L * 2)

    def build(weight_mode):
        in_specs = ([batch_spec(D), batch_spec(L)]
                    + [const_spec(a, weight_mode) for a in w_args])
        return pl.pallas_call(
            make_vae_kernel(L),
            out_shape=out_shapes,
            grid=grid,
            in_specs=in_specs,
            out_specs=out_specs,
            compiler_params=pltpu.CompilerParams(
                dimension_semantics=("parallel",),      # megacore / v7x 2-TC batch split
                vmem_limit_bytes=32 * 1024 * 1024,      # ample headroom on v5e/v6e/v7x
            ),
            cost_estimate=pl.CostEstimate(
                flops=flops, transcendentals=transcendentals,
                bytes_accessed=bytes_accessed),
        )

    try:
        # Weights are never re-fetched: single-buffer them to halve their VMEM footprint.
        recon_p, ml_p = build(pl.Buffered(1))(*args)
    except Exception:
        # Fallback: default double-buffering (still tiny at these dims).
        recon_p, ml_p = build(None)(*args)

    recon = recon_p[:B, :input_dim]
    mean = ml_p[:B, :latent_dim]
    logvar = ml_p[:B, L:L + latent_dim]
    return recon, mean, logvar


# ---------------------------------------------------------------------------
# Init + pure-JAX reference
# ---------------------------------------------------------------------------
def init_params(key, input_dim, hidden_dim, latent_dim):
    """PyTorch-style uniform init; weights stored [in, out] (pre-transposed), f32 masters."""
    def linear(k, fan_in, fan_out):
        kw, kb = jax.random.split(k)
        bound = 1.0 / math.sqrt(fan_in)
        w = jax.random.uniform(kw, (fan_in, fan_out), jnp.float32, -bound, bound)
        b = jax.random.uniform(kb, (1, fan_out), jnp.float32, -bound, bound)
        return w, b

    keys = jax.random.split(key, 5)
    w_enc, b_enc = linear(keys[0], input_dim, hidden_dim)
    w_mu, b_mu = linear(keys[1], hidden_dim, latent_dim)
    w_lv, b_lv = linear(keys[2], hidden_dim, latent_dim)
    w_d1, b_d1 = linear(keys[3], latent_dim, hidden_dim)
    w_d2, b_d2 = linear(keys[4], hidden_dim, input_dim)
    return dict(w_enc=w_enc, b_enc=b_enc, w_mu=w_mu, b_mu=b_mu,
                w_lv=w_lv, b_lv=b_lv, w_d1=w_d1, b_d1=b_d1,
                w_d2=w_d2, b_d2=b_d2)


def vae_forward_ref(x, eps, p):
    """Pure-JAX f32 reference for correctness checking."""
    h = jnp.maximum(x @ p["w_enc"] + p["b_enc"], 0.0)
    mean = h @ p["w_mu"] + p["b_mu"]
    logvar = h @ p["w_lv"] + p["b_lv"]
    z = mean + eps * jnp.exp(0.5 * logvar)
    h2 = jnp.maximum(z @ p["w_d1"] + p["b_d1"], 0.0)
    recon = jax.nn.sigmoid(h2 @ p["w_d2"] + p["b_d2"])
    return recon, mean, logvar


if __name__ == "__main__":
    # Small shapes (deliberately NOT multiples of 128) to exercise the padding path.
    batch = 32
    input_dim = 64
    hidden_dim = 48
    latent_dim = 16

    key = jax.random.PRNGKey(0)
    k_param, k_x, k_eps = jax.random.split(key, 3)

    params = init_params(k_param, input_dim, hidden_dim, latent_dim)
    x = jax.random.normal(k_x, (batch, input_dim), jnp.float32)
    eps = jax.random.normal(k_eps, (batch, latent_dim), jnp.float32)

    # One-time weight packing (hoisted out of the forward per perf review).
    packed, dims = prepare_params(params)
    jax.block_until_ready(packed)

    recon, mean, logvar = vae_forward(x, eps, packed, dims)
    jax.block_until_ready((recon, mean, logvar))

    # Reference uses the same bf16-quantized eps the kernel consumes (apples to apples);
    # the remaining delta is the bf16 matmul operands / bf16 output stores.
    eps_q = eps.astype(jnp.bfloat16).astype(jnp.float32)
    r_ref, m_ref, lv_ref = vae_forward_ref(x, eps_q, params)

    r = recon.astype(jnp.float32)
    m = mean.astype(jnp.float32)
    lv = logvar.astype(jnp.float32)
    assert jnp.allclose(r, r_ref, atol=2e-2, rtol=2e-2), float(jnp.abs(r - r_ref).max())
    assert jnp.allclose(m, m_ref, atol=2e-2, rtol=2e-2), float(jnp.abs(m - m_ref).max())
    assert jnp.allclose(lv, lv_ref, atol=2e-2, rtol=2e-2), float(jnp.abs(lv - lv_ref).max())
    assert bool(jnp.all((r >= 0.0) & (r <= 1.0)))   # sigmoid output stays in [0, 1]

    print("KERNEL_OK")
</pallas_src>

<mosaic_0001>
module attributes {stable_mosaic.version = 11 : i64} {
  func.func @vae_kernel(%arg0: i32, %arg1: memref<16x128xbf16, #tpu.memory_space<vmem>>, %arg2: memref<16x128xbf16, #tpu.memory_space<vmem>>, %arg3: memref<128x128xbf16, #tpu.memory_space<vmem>>, %arg4: memref<1x128xf32, #tpu.memory_space<vmem>>, %arg5: memref<128x256xbf16, #tpu.memory_space<vmem>>, %arg6: memref<1x256xf32, #tpu.memory_space<vmem>>, %arg7: memref<128x128xbf16, #tpu.memory_space<vmem>>, %arg8: memref<1x128xf32, #tpu.memory_space<vmem>>, %arg9: memref<128x128xbf16, #tpu.memory_space<vmem>>, %arg10: memref<1x128xf32, #tpu.memory_space<vmem>>, %arg11: memref<16x128xbf16, #tpu.memory_space<vmem>>, %arg12: memref<16x256xbf16, #tpu.memory_space<vmem>>) attributes {dimension_semantics = [#tpu.dimension_semantics<parallel>], iteration_bounds = array<i64: 2>, scalar_prefetch = 0 : i64, scratch_operands = 0 : i64, tpu.core_type = #tpu.core_type<tc>, window_params = [{transform_indices = @transform_0, window_bounds = array<i64: 16, 128>}, {transform_indices = @transform_1, window_bounds = array<i64: 16, 128>}, {pipeline_mode = #tpu.pipeline_mode<synchronous>, transform_indices = @transform_2, window_bounds = array<i64: 128, 128>}, {pipeline_mode = #tpu.pipeline_mode<synchronous>, transform_indices = @transform_3, window_bounds = array<i64: 1, 128>}, {pipeline_mode = #tpu.pipeline_mode<synchronous>, transform_indices = @transform_4, window_bounds = array<i64: 128, 256>}, {pipeline_mode = #tpu.pipeline_mode<synchronous>, transform_indices = @transform_5, window_bounds = array<i64: 1, 256>}, {pipeline_mode = #tpu.pipeline_mode<synchronous>, transform_indices = @transform_6, window_bounds = array<i64: 128, 128>}, {pipeline_mode = #tpu.pipeline_mode<synchronous>, transform_indices = @transform_7, window_bounds = array<i64: 1, 128>}, {pipeline_mode = #tpu.pipeline_mode<synchronous>, transform_indices = @transform_8, window_bounds = array<i64: 128, 128>}, {pipeline_mode = #tpu.pipeline_mode<synchronous>, transform_indices = @transform_9, window_bounds = array<i64: 1, 128>}, {transform_indices = @transform_10, window_bounds = array<i64: 16, 128>}, {transform_indices = @transform_11, window_bounds = array<i64: 16, 256>}]} {
    %c0 = arith.constant 0 : index
    %c0_0 = arith.constant 0 : index
    %0 = vector.load %arg1[%c0, %c0_0] : memref<16x128xbf16, #tpu.memory_space<vmem>>, vector<16x128xbf16>
    %c0_1 = arith.constant 0 : index
    %c0_2 = arith.constant 0 : index
    %1 = vector.load %arg3[%c0_1, %c0_2] : memref<128x128xbf16, #tpu.memory_space<vmem>>, vector<128x128xbf16>
    %cst = arith.constant dense<0.000000e+00> : vector<16x128xf32>
    %2 = tpu.matmul %0, %1, %cst {dimension_numbers = #tpu.dot_dimension_numbers<[1], [0], [0], [1], [0, 0, 1, 1], [], []>} : vector<16x128xbf16>, vector<128x128xbf16>, vector<16x128xf32> -> vector<16x128xf32>
    %c0_3 = arith.constant 0 : index
    %c0_4 = arith.constant 0 : index
    %3 = vector.load %arg4[%c0_3, %c0_4] : memref<1x128xf32, #tpu.memory_space<vmem>>, vector<1x128xf32>
    %4 = vector.broadcast %3 : vector<1x128xf32> to vector<16x128xf32>
    %5 = arith.addf %2, %4 : vector<16x128xf32>
    %cst_5 = arith.constant 0.000000e+00 : f32
    %6 = vector.broadcast %cst_5 : f32 to vector<16x128xf32>
    %7 = arith.maximumf %5, %6 : vector<16x128xf32>
    %8 = arith.truncf %7 : vector<16x128xf32> to vector<16x128xbf16>
    %c0_6 = arith.constant 0 : index
    %c0_7 = arith.constant 0 : index
    %9 = vector.load %arg5[%c0_6, %c0_7] : memref<128x256xbf16, #tpu.memory_space<vmem>>, vector<128x256xbf16>
    %cst_8 = arith.constant dense<0.000000e+00> : vector<16x256xf32>
    %10 = tpu.matmul %8, %9, %cst_8 {dimension_numbers = #tpu.dot_dimension_numbers<[1], [0], [0], [1], [0, 0, 1, 1], [], []>} : vector<16x128xbf16>, vector<128x256xbf16>, vector<16x256xf32> -> vector<16x256xf32>
    %c0_9 = arith.constant 0 : index
    %c0_10 = arith.constant 0 : index
    %11 = vector.load %arg6[%c0_9, %c0_10] : memref<1x256xf32, #tpu.memory_space<vmem>>, vector<1x256xf32>
    %12 = vector.broadcast %11 : vector<1x256xf32> to vector<16x256xf32>
    %13 = arith.addf %10, %12 : vector<16x256xf32>
    %14 = vector.extract_strided_slice %13 {offsets = [0, 0], sizes = [16, 128], strides = [1, 1]} : vector<16x256xf32> to vector<16x128xf32>
    %15 = vector.extract_strided_slice %13 {offsets = [0, 128], sizes = [16, 128], strides = [1, 1]} : vector<16x256xf32> to vector<16x128xf32>
    %cst_11 = arith.constant 5.000000e-01 : f32
    %16 = vector.broadcast %cst_11 : f32 to vector<16x128xf32>
    %17 = arith.mulf %16, %15 : vector<16x128xf32>
    %18 = math.exp %17 : vector<16x128xf32>
    %c0_12 = arith.constant 0 : index
    %c0_13 = arith.constant 0 : index
    %19 = vector.load %arg2[%c0_12, %c0_13] : memref<16x128xbf16, #tpu.memory_space<vmem>>, vector<16x128xbf16>
    %20 = arith.extf %19 : vector<16x128xbf16> to vector<16x128xf32>
    %21 = arith.mulf %20, %18 : vector<16x128xf32>
    %22 = arith.addf %14, %21 : vector<16x128xf32>
    %23 = arith.truncf %22 : vector<16x128xf32> to vector<16x128xbf16>
    %c0_14 = arith.constant 0 : index
    %c0_15 = arith.constant 0 : index
    %24 = vector.load %arg7[%c0_14, %c0_15] : memref<128x128xbf16, #tpu.memory_space<vmem>>, vector<128x128xbf16>
    %cst_16 = arith.constant dense<0.000000e+00> : vector<16x128xf32>
    %25 = tpu.matmul %23, %24, %cst_16 {dimension_numbers = #tpu.dot_dimension_numbers<[1], [0], [0], [1], [0, 0, 1, 1], [], []>} : vector<16x128xbf16>, vector<128x128xbf16>, vector<16x128xf32> -> vector<16x128xf32>
    %c0_17 = arith.constant 0 : index
    %c0_18 = arith.constant 0 : index
    %26 = vector.load %arg8[%c0_17, %c0_18] : memref<1x128xf32, #tpu.memory_space<vmem>>, vector<1x128xf32>
    %27 = vector.broadcast %26 : vector<1x128xf32> to vector<16x128xf32>
    %28 = arith.addf %25, %27 : vector<16x128xf32>
    %cst_19 = arith.constant 0.000000e+00 : f32
    %29 = vector.broadcast %cst_19 : f32 to vector<16x128xf32>
    %30 = arith.maximumf %28, %29 : vector<16x128xf32>
    %31 = arith.truncf %30 : vector<16x128xf32> to vector<16x128xbf16>
    %c0_20 = arith.constant 0 : index
    %c0_21 = arith.constant 0 : index
    %32 = vector.load %arg9[%c0_20, %c0_21] : memref<128x128xbf16, #tpu.memory_space<vmem>>, vector<128x128xbf16>
    %cst_22 = arith.constant dense<0.000000e+00> : vector<16x128xf32>
    %33 = tpu.matmul %31, %32, %cst_22 {dimension_numbers = #tpu.dot_dimension_numbers<[1], [0], [0], [1], [0, 0, 1, 1], [], []>} : vector<16x128xbf16>, vector<128x128xbf16>, vector<16x128xf32> -> vector<16x128xf32>
    %c0_23 = arith.constant 0 : index
    %c0_24 = arith.constant 0 : index
    %34 = vector.load %arg10[%c0_23, %c0_24] : memref<1x128xf32, #tpu.memory_space<vmem>>, vector<1x128xf32>
    %35 = vector.broadcast %34 : vector<1x128xf32> to vector<16x128xf32>
    %36 = arith.addf %33, %35 : vector<16x128xf32>
    %cst_25 = arith.constant 0.000000e+00 : f32
    %37 = vector.broadcast %cst_25 : f32 to vector<16x128xf32>
    %38 = arith.subf %37, %36 : vector<16x128xf32>
    %39 = math.exp %38 : vector<16x128xf32>
    %cst_26 = arith.constant 1.000000e+00 : f32
    %40 = vector.broadcast %cst_26 : f32 to vector<16x128xf32>
    %41 = arith.addf %40, %39 : vector<16x128xf32>
    %42 = tpu.reciprocal %41 {approx = true} : vector<16x128xf32> -> vector<16x128xf32>
    %cst_27 = arith.constant 0.000000e+00 : f32
    %cst_28 = arith.constant 1.000000e+00 : f32
    %43 = vector.broadcast %cst_27 : f32 to vector<16x128xf32>
    %44 = arith.maximumf %43, %42 : vector<16x128xf32>
    %45 = vector.broadcast %cst_28 : f32 to vector<16x128xf32>
    %46 = arith.minimumf %45, %44 : vector<16x128xf32>
    %47 = arith.truncf %46 : vector<16x128xf32> to vector<16x128xbf16>
    %c0_29 = arith.constant 0 : index
    %c0_30 = arith.constant 0 : index
    %48 = vector.load %arg11[%c0_29, %c0_30] : memref<16x128xbf16, #tpu.memory_space<vmem>>, vector<16x128xbf16>
    tpu.vector_store %arg11[%c0_29, %c0_30], %47 {strides = array<i32>} : memref<16x128xbf16, #tpu.memory_space<vmem>>, vector<16x128xbf16>,
    %49 = arith.truncf %13 : vector<16x256xf32> to vector<16x256xbf16>
    %c0_31 = arith.constant 0 : index
    %c0_32 = arith.constant 0 : index
    %50 = vector.load %arg12[%c0_31, %c0_32] : memref<16x256xbf16, #tpu.memory_space<vmem>>, vector<16x256xbf16>
    tpu.vector_store %arg12[%c0_31, %c0_32], %49 {strides = array<i32>} : memref<16x256xbf16, #tpu.memory_space<vmem>>, vector<16x256xbf16>,
    return
  }
  func.func @transform_0(%arg0: i32) -> (i32, i32) {
    %c0_i32 = arith.constant 0 : i32
    %c0_i32_0 = arith.constant 0 : i32
    return %arg0, %c0_i32 : i32, i32
  }
  func.func @transform_1(%arg0: i32) -> (i32, i32) {
    %c0_i32 = arith.constant 0 : i32
    %c0_i32_0 = arith.constant 0 : i32
    return %arg0, %c0_i32 : i32, i32
  }
  func.func @transform_2(%arg0: i32) -> (i32, i32) {
    %c0_i32 = arith.constant 0 : i32
    %c0_i32_0 = arith.constant 0 : i32
    %c0_i32_1 = arith.constant 0 : i32
    return %c0_i32, %c0_i32_0 : i32, i32
  }
  func.func @transform_3(%arg0: i32) -> (i32, i32) {
    %c0_i32 = arith.constant 0 : i32
    %c0_i32_0 = arith.constant 0 : i32
    %c0_i32_1 = arith.constant 0 : i32
    return %c0_i32, %c0_i32_0 : i32, i32
  }
  func.func @transform_4(%arg0: i32) -> (i32, i32) {
    %c0_i32 = arith.constant 0 : i32
    %c0_i32_0 = arith.constant 0 : i32
    %c0_i32_1 = arith.constant 0 : i32
    return %c0_i32, %c0_i32_0 : i32, i32
  }
  func.func @transform_5(%arg0: i32) -> (i32, i32) {
    %c0_i32 = arith.constant 0 : i32
    %c0_i32_0 = arith.constant 0 : i32
    %c0_i32_1 = arith.constant 0 : i32
    return %c0_i32, %c0_i32_0 : i32, i32
  }
  func.func @transform_6(%arg0: i32) -> (i32, i32) {
    %c0_i32 = arith.constant 0 : i32
    %c0_i32_0 = arith.constant 0 : i32
    %c0_i32_1 = arith.constant 0 : i32
    return %c0_i32, %c0_i32_0 : i32, i32
  }
  func.func @transform_7(%arg0: i32) -> (i32, i32) {
    %c0_i32 = arith.constant 0 : i32
    %c0_i32_0 = arith.constant 0 : i32
    %c0_i32_1 = arith.constant 0 : i32
    return %c0_i32, %c0_i32_0 : i32, i32
  }
  func.func @transform_8(%arg0: i32) -> (i32, i32) {
    %c0_i32 = arith.constant 0 : i32
    %c0_i32_0 = arith.constant 0 : i32
    %c0_i32_1 = arith.constant 0 : i32
    return %c0_i32, %c0_i32_0 : i32, i32
  }
  func.func @transform_9(%arg0: i32) -> (i32, i32) {
    %c0_i32 = arith.constant 0 : i32
    %c0_i32_0 = arith.constant 0 : i32
    %c0_i32_1 = arith.constant 0 : i32
    return %c0_i32, %c0_i32_0 : i32, i32
  }
  func.func @transform_10(%arg0: i32) -> (i32, i32) {
    %c0_i32 = arith.constant 0 : i32
    %c0_i32_0 = arith.constant 0 : i32
    return %arg0, %c0_i32 : i32, i32
  }
  func.func @transform_11(%arg0: i32) -> (i32, i32) {
    %c0_i32 = arith.constant 0 : i32
    %c0_i32_0 = arith.constant 0 : i32
    return %arg0, %c0_i32 : i32, i32
  }
}

module attributes {stable_mosaic.version = 11 : i64} {
  func.func @vae_kernel(%arg0: i32, %arg1: memref<16x128xbf16, #tpu.memory_space<vmem>>, %arg2: memref<16x128xbf16, #tpu.memory_space<vmem>>, %arg3: memref<128x128xbf16, #tpu.memory_space<vmem>>, %arg4: memref<1x128xf32, #tpu.memory_space<vmem>>, %arg5: memref<128x256xbf16, #tpu.memory_space<vmem>>, %arg6: memref<1x256xf32, #tpu.memory_space<vmem>>, %arg7: memref<128x128xbf16, #tpu.memory_space<vmem>>, %arg8: memref<1x128xf32, #tpu.memory_space<vmem>>, %arg9: memref<128x128xbf16, #tpu.memory_space<vmem>>, %arg10: memref<1x128xf32, #tpu.memory_space<vmem>>, %arg11: memref<16x128xbf16, #tpu.memory_space<vmem>>, %arg12: memref<16x256xbf16, #tpu.memory_space<vmem>>) attributes {dimension_semantics = [#tpu.dimension_semantics<parallel>], iteration_bounds = array<i64: 2>, scalar_prefetch = 0 : i64, scratch_operands = 0 : i64, tpu.core_type = #tpu.core_type<tc>, window_params = [{transform_indices = @transform_0, window_bounds = array<i64: 16, 128>}, {transform_indices = @transform_1, window_bounds = array<i64: 16, 128>}, {pipeline_mode = #tpu.pipeline_mode<synchronous>, transform_indices = @transform_2, window_bounds = array<i64: 128, 128>}, {pipeline_mode = #tpu.pipeline_mode<synchronous>, transform_indices = @transform_3, window_bounds = array<i64: 1, 128>}, {pipeline_mode = #tpu.pipeline_mode<synchronous>, transform_indices = @transform_4, window_bounds = array<i64: 128, 256>}, {pipeline_mode = #tpu.pipeline_mode<synchronous>, transform_indices = @transform_5, window_bounds = array<i64: 1, 256>}, {pipeline_mode = #tpu.pipeline_mode<synchronous>, transform_indices = @transform_6, window_bounds = array<i64: 128, 128>}, {pipeline_mode = #tpu.pipeline_mode<synchronous>, transform_indices = @transform_7, window_bounds = array<i64: 1, 128>}, {pipeline_mode = #tpu.pipeline_mode<synchronous>, transform_indices = @transform_8, window_bounds = array<i64: 128, 128>}, {pipeline_mode = #tpu.pipeline_mode<synchronous>, transform_indices = @transform_9, window_bounds = array<i64: 1, 128>}, {transform_indices = @transform_10, window_bounds = array<i64: 16, 128>}, {transform_indices = @transform_11, window_bounds = array<i64: 16, 256>}]} {
    %c0 = arith.constant 0 : index
    %c0_0 = arith.constant 0 : index
    %0 = vector.load %arg1[%c0, %c0_0] : memref<16x128xbf16, #tpu.memory_space<vmem>>, vector<16x128xbf16>
    %c0_1 = arith.constant 0 : index
    %c0_2 = arith.constant 0 : index
    %1 = vector.load %arg3[%c0_1, %c0_2] : memref<128x128xbf16, #tpu.memory_space<vmem>>, vector<128x128xbf16>
    %cst = arith.constant dense<0.000000e+00> : vector<16x128xf32>
    %2 = tpu.matmul %0, %1, %cst {dimension_numbers = #tpu.dot_dimension_numbers<[1], [0], [0], [1], [0, 0, 1, 1], [], []>} : vector<16x128xbf16>, vector<128x128xbf16>, vector<16x128xf32> -> vector<16x128xf32>
    %c0_3 = arith.constant 0 : index
    %c0_4 = arith.constant 0 : index
    %3 = vector.load %arg4[%c0_3, %c0_4] : memref<1x128xf32, #tpu.memory_space<vmem>>, vector<1x128xf32>
    %4 = vector.broadcast %3 : vector<1x128xf32> to vector<16x128xf32>
    %5 = arith.addf %2, %4 : vector<16x128xf32>
    %cst_5 = arith.constant 0.000000e+00 : f32
    %6 = vector.broadcast %cst_5 : f32 to vector<16x128xf32>
    %7 = arith.maximumf %5, %6 : vector<16x128xf32>
    %8 = arith.truncf %7 : vector<16x128xf32> to vector<16x128xbf16>
    %c0_6 = arith.constant 0 : index
    %c0_7 = arith.constant 0 : index
    %9 = vector.load %arg5[%c0_6, %c0_7] : memref<128x256xbf16, #tpu.memory_space<vmem>>, vector<128x256xbf16>
    %cst_8 = arith.constant dense<0.000000e+00> : vector<16x256xf32>
    %10 = tpu.matmul %8, %9, %cst_8 {dimension_numbers = #tpu.dot_dimension_numbers<[1], [0], [0], [1], [0, 0, 1, 1], [], []>} : vector<16x128xbf16>, vector<128x256xbf16>, vector<16x256xf32> -> vector<16x256xf32>
    %c0_9 = arith.constant 0 : index
    %c0_10 = arith.constant 0 : index
    %11 = vector.load %arg6[%c0_9, %c0_10] : memref<1x256xf32, #tpu.memory_space<vmem>>, vector<1x256xf32>
    %12 = vector.broadcast %11 : vector<1x256xf32> to vector<16x256xf32>
    %13 = arith.addf %10, %12 : vector<16x256xf32>
    %14 = vector.extract_strided_slice %13 {offsets = [0, 0], sizes = [16, 128], strides = [1, 1]} : vector<16x256xf32> to vector<16x128xf32>
    %15 = vector.extract_strided_slice %13 {offsets = [0, 128], sizes = [16, 128], strides = [1, 1]} : vector<16x256xf32> to vector<16x128xf32>
    %cst_11 = arith.constant 5.000000e-01 : f32
    %16 = vector.broadcast %cst_11 : f32 to vector<16x128xf32>
    %17 = arith.mulf %16, %15 : vector<16x128xf32>
    %18 = math.exp %17 : vector<16x128xf32>
    %c0_12 = arith.constant 0 : index
    %c0_13 = arith.constant 0 : index
    %19 = vector.load %arg2[%c0_12, %c0_13] : memref<16x128xbf16, #tpu.memory_space<vmem>>, vector<16x128xbf16>
    %20 = arith.extf %19 : vector<16x128xbf16> to vector<16x128xf32>
    %21 = arith.mulf %20, %18 : vector<16x128xf32>
    %22 = arith.addf %14, %21 : vector<16x128xf32>
    %23 = arith.truncf %22 : vector<16x128xf32> to vector<16x128xbf16>
    %c0_14 = arith.constant 0 : index
    %c0_15 = arith.constant 0 : index
    %24 = vector.load %arg7[%c0_14, %c0_15] : memref<128x128xbf16, #tpu.memory_space<vmem>>, vector<128x128xbf16>
    %cst_16 = arith.constant dense<0.000000e+00> : vector<16x128xf32>
    %25 = tpu.matmul %23, %24, %cst_16 {dimension_numbers = #tpu.dot_dimension_numbers<[1], [0], [0], [1], [0, 0, 1, 1], [], []>} : vector<16x128xbf16>, vector<128x128xbf16>, vector<16x128xf32> -> vector<16x128xf32>
    %c0_17 = arith.constant 0 : index
    %c0_18 = arith.constant 0 : index
    %26 = vector.load %arg8[%c0_17, %c0_18] : memref<1x128xf32, #tpu.memory_space<vmem>>, vector<1x128xf32>
    %27 = vector.broadcast %26 : vector<1x128xf32> to vector<16x128xf32>
    %28 = arith.addf %25, %27 : vector<16x128xf32>
    %cst_19 = arith.constant 0.000000e+00 : f32
    %29 = vector.broadcast %cst_19 : f32 to vector<16x128xf32>
    %30 = arith.maximumf %28, %29 : vector<16x128xf32>
    %31 = arith.truncf %30 : vector<16x128xf32> to vector<16x128xbf16>
    %c0_20 = arith.constant 0 : index
    %c0_21 = arith.constant 0 : index
    %32 = vector.load %arg9[%c0_20, %c0_21] : memref<128x128xbf16, #tpu.memory_space<vmem>>, vector<128x128xbf16>
    %cst_22 = arith.constant dense<0.000000e+00> : vector<16x128xf32>
    %33 = tpu.matmul %31, %32, %cst_22 {dimension_numbers = #tpu.dot_dimension_numbers<[1], [0], [0], [1], [0, 0, 1, 1], [], []>} : vector<16x128xbf16>, vector<128x128xbf16>, vector<16x128xf32> -> vector<16x128xf32>
    %c0_23 = arith.constant 0 : index
    %c0_24 = arith.constant 0 : index
    %34 = vector.load %arg10[%c0_23, %c0_24] : memref<1x128xf32, #tpu.memory_space<vmem>>, vector<1x128xf32>
    %35 = vector.broadcast %34 : vector<1x128xf32> to vector<16x128xf32>
    %36 = arith.addf %33, %35 : vector<16x128xf32>
    %cst_25 = arith.constant 0.000000e+00 : f32
    %37 = vector.broadcast %cst_25 : f32 to vector<16x128xf32>
    %38 = arith.subf %37, %36 : vector<16x128xf32>
    %39 = math.exp %38 : vector<16x128xf32>
    %cst_26 = arith.constant 1.000000e+00 : f32
    %40 = vector.broadcast %cst_26 : f32 to vector<16x128xf32>
    %41 = arith.addf %40, %39 : vector<16x128xf32>
    %42 = tpu.reciprocal %41 {approx = true} : vector<16x128xf32> -> vector<16x128xf32>
    %cst_27 = arith.constant 0.000000e+00 : f32
    %cst_28 = arith.constant 1.000000e+00 : f32
    %43 = vector.broadcast %cst_27 : f32 to vector<16x128xf32>
    %44 = arith.maximumf %43, %42 : vector<16x128xf32>
    %45 = vector.broadcast %cst_28 : f32 to vector<16x128xf32>
    %46 = arith.minimumf %45, %44 : vector<16x128xf32>
    %47 = arith.truncf %46 : vector<16x128xf32> to vector<16x128xbf16>
    %c0_29 = arith.constant 0 : index
    %c0_30 = arith.constant 0 : index
    %48 = vector.load %arg11[%c0_29, %c0_30] : memref<16x128xbf16, #tpu.memory_space<vmem>>, vector<16x128xbf16>
    tpu.vector_store %arg11[%c0_29, %c0_30], %47 {strides = array<i32>} : memref<16x128xbf16, #tpu.memory_space<vmem>>, vector<16x128xbf16>,
    %49 = arith.truncf %13 : vector<16x256xf32> to vector<16x256xbf16>
    %c0_31 = arith.constant 0 : index
    %c0_32 = arith.constant 0 : index
    %50 = vector.load %arg12[%c0_31, %c0_32] : memref<16x256xbf16, #tpu.memory_space<vmem>>, vector<16x256xbf16>
    tpu.vector_store %arg12[%c0_31, %c0_32], %49 {strides = array<i32>} : memref<16x256xbf16, #tpu.memory_space<vmem>>, vector<16x256xbf16>,
    return
  }
  func.func @transform_0(%arg0: i32) -> (i32, i32) {
    %c0_i32 = arith.constant 0 : i32
    %c0_i32_0 = arith.constant 0 : i32
    return %arg0, %c0_i32 : i32, i32
  }
  func.func @transform_1(%arg0: i32) -> (i32, i32) {
    %c0_i32 = arith.constant 0 : i32
    %c0_i32_0 = arith.constant 0 : i32
    return %arg0, %c0_i32 : i32, i32
  }
  func.func @transform_2(%arg0: i32) -> (i32, i32) {
    %c0_i32 = arith.constant 0 : i32
    %c0_i32_0 = arith.constant 0 : i32
    %c0_i32_1 = arith.constant 0 : i32
    return %c0_i32, %c0_i32_0 : i32, i32
  }
  func.func @transform_3(%arg0: i32) -> (i32, i32) {
    %c0_i32 = arith.constant 0 : i32
    %c0_i32_0 = arith.constant 0 : i32
    %c0_i32_1 = arith.constant 0 : i32
    return %c0_i32, %c0_i32_0 : i32, i32
  }
  func.func @transform_4(%arg0: i32) -> (i32, i32) {
    %c0_i32 = arith.constant 0 : i32
    %c0_i32_0 = arith.constant 0 : i32
    %c0_i32_1 = arith.constant 0 : i32
    return %c0_i32, %c0_i32_0 : i32, i32
  }
  func.func @transform_5(%arg0: i32) -> (i32, i32) {
    %c0_i32 = arith.constant 0 : i32
    %c0_i32_0 = arith.constant 0 : i32
    %c0_i32_1 = arith.constant 0 : i32
    return %c0_i32, %c0_i32_0 : i32, i32
  }
  func.func @transform_6(%arg0: i32) -> (i32, i32) {
    %c0_i32 = arith.constant 0 : i32
    %c0_i32_0 = arith.constant 0 : i32
    %c0_i32_1 = arith.constant 0 : i32
    return %c0_i32, %c0_i32_0 : i32, i32
  }
  func.func @transform_7(%arg0: i32) -> (i32, i32) {
    %c0_i32 = arith.constant 0 : i32
    %c0_i32_0 = arith.constant 0 : i32
    %c0_i32_1 = arith.constant 0 : i32
    return %c0_i32, %c0_i32_0 : i32, i32
  }
  func.func @transform_8(%arg0: i32) -> (i32, i32) {
    %c0_i32 = arith.constant 0 : i32
    %c0_i32_0 = arith.constant 0 : i32
    %c0_i32_1 = arith.constant 0 : i32
    return %c0_i32, %c0_i32_0 : i32, i32
  }
  func.func @transform_9(%arg0: i32) -> (i32, i32) {
    %c0_i32 = arith.constant 0 : i32
    %c0_i32_0 = arith.constant 0 : i32
    %c0_i32_1 = arith.constant 0 : i32
    return %c0_i32, %c0_i32_0 : i32, i32
  }
  func.func @transform_10(%arg0: i32) -> (i32, i32) {
    %c0_i32 = arith.constant 0 : i32
    %c0_i32_0 = arith.constant 0 : i32
    return %arg0, %c0_i32 : i32, i32
  }
  func.func @transform_11(%arg0: i32) -> (i32, i32) {
    %c0_i32 = arith.constant 0 : i32
    %c0_i32_0 = arith.constant 0 : i32
    return %arg0, %c0_i32 : i32, i32
  }
}

</mosaic_0001>

<bundles_post_ra>
// kernel: tpu_custom_call.1
= control target key start
LH: loop header
LB: loop body
LE: loop exit
PB: predicated region body
PF: predicated region fallthrough
CT: control target
= control target key end

     0   :  { %s2426_s0 = inlined_call_operand.hbm [shape: bf16[32,128], index: 0, kind: input, shape index: {}]   ;;  %s2427_s1 = inlined_call_operand.hbm [shape: bf16[32,128], index: 1, kind: input, shape index: {}]   ;;  %s2428_s2 = inlined_call_operand.hbm [shape: bf16[128,128], index: 2, kind: input, shape index: {}]   ;;  %s2429_s3 = inlined_call_operand.vmem [shape: f32[1,128], index: 3, kind: input, shape index: {}]   ;;  %s2430_s4 = inlined_call_operand.hbm [shape: bf16[128,256], index: 4, kind: input, shape index: {}]   ;;  %s2431_s5 = inlined_call_operand.vmem [shape: f32[1,256], index: 5, kind: input, shape index: {}]   ;;  %s2432_s6 = inlined_call_operand.hbm [shape: bf16[128,128], index: 6, kind: input, shape index: {}]   ;;  %s2433_s7 = inlined_call_operand.vmem [shape: f32[1,128], index: 7, kind: input, shape index: {}]   ;;  %s2434_s8 = inlined_call_operand.hbm [shape: bf16[128,128], index: 8, kind: input, shape index: {}]   ;;  %s2435_s9 = inlined_call_operand.vmem [shape: f32[1,128], index: 9, kind: input, shape index: {}]   ;;  %s2436_s10 = inlined_call_operand.hbm [shape: bf16[32,128], index: 10, kind: output, shape index: {0}]   ;;  %s2437_s11 = inlined_call_operand.hbm [shape: bf16[32,256], index: 11, kind: output, shape index: {1}]  }
   0x1   :  { %2448 = sst [smem:[#allocation26_spill]] %s2428_s2 }
   0x2   :  { %2449 = sst [smem:[#allocation27_spill]] %s2430_s4 }
   0x3   :  { %2450 = sst [smem:[#allocation28_spill]] %s2432_s6 }
   0x4   :  { %2451 = sst [smem:[#allocation29_spill]] %s2434_s8 }
   0x5   :  { %2452 = sst [smem:[#allocation30_spill]] %s2435_s9 }
   0x6   :  { %2453 = sst [smem:[#allocation31_spill]] %s2436_s10 }
   0x7   :  { %17 = vsyncpa [#allocation3], 0 }
   0x8   :  { %19 = vsyncpa [#allocation3 + $0x1], 0 }
   0x9   :  { %20 = vsyncpa [#allocation6], 0 }
   0xa   :  { %22 = vsyncpa [#allocation6 + $0x1], 0 }
   0xb   :  { %23 = vsyncpa [#allocation9], 0 }
   0xc   :  { %24 = vsyncpa [#allocation12], 0 }
   0xd   :  { %25 = vsyncpa [#allocation4], 0 }
   0xe   :  { %27 = vsyncpa [#allocation4 + $0x1], 0 }
   0xf   :  { %28 = vsyncpa [#allocation15], 0 }
  0x10   :  { %30 = vsyncpa [#allocation15 + $0x1], 0  ;;  %s1995_s17 = smov 0   ;;  %s1997_s18 = smov 0  }
  0x11   :  { %s1999_s19 = smov 0   ;;  %s2001_s20 = smov 0  }
  0x12 LB: > { %2454 = sst [smem:[#allocation23_spill]] %s1902_s17  ;;  %s2016_s21 = sadd.s32 4294967295, %s1914_s20   ;;  %s1914_s20 = sphi %s2001_s20, %s2489_s20   ;;  %s1910_s19 = sphi %s1999_s19, %s2488_s19   ;;  %s1906_s18 = sphi %s1997_s18, %s2487_s18   ;;  %s1902_s17 = sphi %s1995_s17, %s2486_s17  }
  0x13   : > { %s1275_s22 = sadd.s32 4294967294, %s1914_s20   ;;  %p56_p0 = scmp.ne.s32.totalorder %s1906_s18, %s1902_s17 }
  0x14   : > { %p2438_p1 = scmp.eq.s32.totalorder %s2016_s21, 0  ;;  %p280_p3 = scmp.eq.s32.totalorder %s1275_s22, 1 }
  0x15   : > { %p1276_p5 = scmp.ge.s32.totalorder %s1914_s20, 1  ;;  %p313_p7 = scmp.lt.s32.totalorder %s1914_s20, 3 }
  0x16   : > { %p2025_p4 = por %p2438_p1, %p56_p0  ;;  %p2030_p6 = por %p280_p3, %p56_p0 }
  0x17   : > { %p2035_p8 = pnand %p1276_p5, %p313_p7  ;;  %s1916_s26 = smov [#allocation7]  }
  0x18   : > { %s2455_s23 = scalar_select %p2025_p4, 1, 0 }
  0x19   : > { %s2456_s24 = scalar_select %p2030_p6, 1, 0 }
  0x1a   : > { %s2458_s25 = scalar_select %p2035_p8, 1, 0 }
  0x1b   : > { %2457 = sst [smem:[#allocation24_spill]] %s2456_s24  ;;  %s325_s27 = sshll.u32 %s1916_s26, 4  ;;  %s2039_s27 = int_to_ptr.vmem [resolvable:$true] %s325_s27 }
  0x1c   : > { %p1483_p9 = pneg %p2035_p8  ;;  %s1917_s29 = smov [#allocation8]  }
  0x1d   : > { %s341_s30 = sshll.u32 %s1917_s29, 4  ;;  %s2460_s2 = sld [smem:[#allocation26_spill]]  ;;  %s2050_s30 = int_to_ptr.vmem [resolvable:$true] %s341_s30 }
  0x1e   : > { %p2046_p11 = pnand %p1483_p9, %p2438_p1 }
  0x20   : > { %p2060_p13 = pneg %p2046_p11 }
  0x23   : > { %s1628_s14 = scalar_lea.hbm %s2460_s2, 1024 }
  0x24   : > { %p1629_p12 = scmp.ne.s32.totalorder %s2460_s2, %s1628_s14  ;;  %p1635_p5 = scmp.lt.u32.totalorder %s1628_s14, %s2460_s2 }
  0x26   : > { %p1631_p0 = pnand %p2060_p13, %p1629_p12 }
  0x28   : > { %p1632_p3 = pneg %p1631_p0 }
  0x2a   : > { %p1637_p7 = pnand %p1635_p5, %p1632_p3 }
  0x2c   : > { %1640 = shalt.err (!%p1637_p7)
}
  0x2d   : > { %s1641_s12 = scalar_lea.vmem %s2039_s27, 1024  ;;  %p1649_p2 = scmp.lt.s32.totalorder %s2039_s27, %s2039_s27 }
  0x2e   : > { %p1642_p9 = scmp.ne.s32.totalorder %s2039_s27, %s1641_s12  ;;  %p1650_p6 = scmp.lt.s32.totalorder %s1641_s12, %s1641_s12 }
  0x30   : > { %p1644_p10 = pnand %p1642_p9, %p2060_p13  ;;  %p1651_p12 = por %p1650_p6, %p1649_p2 }
  0x32   : > { %p1645_p1 = pneg %p1644_p10 }
  0x34   : > { %p1652_p0 = pnand %p1651_p12, %p1645_p1 }
  0x36   : > { %1655 = shalt.err (!%p1652_p0)
}
  0x37   : > { %s2442_s13 = smov 64   ;;  %s2444_s14 = smov 4  }
  0x38   : > { %1486 = dma.hbm_to_vmem [thread:$0]  (!%p2046_p11), %s2460_s2, 1024, %s2039_s27, [#allocation6], %s2442_s13, %s2442_s13, %s2444_s14  }
  0x39   : > { %s2462_s4 = sld [smem:[#allocation27_spill]] }
  0x3f   : > { %s1656_s12 = scalar_lea.hbm %s2462_s4, 2048 }
  0x40   : > { %p1657_p1 = scmp.ne.s32.totalorder %s2462_s4, %s1656_s12  ;;  %p1663_p10 = scmp.lt.u32.totalorder %s1656_s12, %s2462_s4 }
  0x42   : > { %p1659_p2 = pnand %p1657_p1, %p2060_p13 }
  0x44   : > { %p1660_p6 = pneg %p1659_p2 }
  0x46   : > { %p1665_p3 = pnand %p1663_p10, %p1660_p6 }
  0x48   : > { %1668 = shalt.err (!%p1665_p3)
}
  0x49   : > { %s1669_s27 = scalar_lea.vmem %s2050_s30, 2048  ;;  %p1677_p12 = scmp.lt.s32.totalorder %s2050_s30, %s2050_s30 }
  0x4a   : > { %p1670_p5 = scmp.ne.s32.totalorder %s2050_s30, %s1669_s27  ;;  %p1678_p0 = scmp.lt.s32.totalorder %s1669_s27, %s1669_s27 }
  0x4c   : > { %p1672_p7 = pnand %p1670_p5, %p2060_p13  ;;  %p1679_p1 = por %p1678_p0, %p1677_p12 }
  0x4e   : > { %p1673_p9 = pneg %p1672_p7 }
  0x50   : > { %p1680_p2 = pnand %p1679_p1, %p1673_p9 }
  0x52   : > { %1683 = shalt.err (!%p1680_p2)
}
  0x53   : > { %s1920_s17 = smov 128   ;;  %s1921_s9 = smov 8  }
  0x54   : > { %1489 = dma.hbm_to_vmem [thread:$0]  (!%p2046_p11), %s2462_s4, 2048, %s2050_s30, [#allocation9], %s1920_s17, %s1920_s17, %s1921_s9  }
  0x55   : > { %s1922_s15 = smov [#allocation10]   ;;  %s1923_s26 = smov [#allocation11]  }
  0x56   : > { %s357_s16 = sshll.u32 %s1922_s15, 4  ;;  %s373_s29 = sshll.u32 %s1923_s26, 4  ;;  %s358_s16 = int_to_ptr.vmem [resolvable:$true] %s357_s16  ;;  %s2107_s29 = int_to_ptr.vmem [resolvable:$true] %s373_s29 }
  0x57   : > { %s2463_s6 = sld [smem:[#allocation28_spill]] }
  0x5d   : > { %s1684_s13 = scalar_lea.hbm %s2463_s6, 1024 }
  0x5e   : > { %p1685_p6 = scmp.ne.s32.totalorder %s2463_s6, %s1684_s13  ;;  %p1691_p5 = scmp.lt.u32.totalorder %s1684_s13, %s2463_s6 }
  0x60   : > { %p1687_p10 = pnand %p1685_p6, %p2060_p13 }
  0x62   : > { %p1688_p3 = pneg %p1687_p10 }
  0x64   : > { %p1693_p7 = pnand %p1691_p5, %p1688_p3 }
  0x66   : > { %1696 = shalt.err (!%p1693_p7)
}
  0x67   : > { %s1697_s17 = scalar_lea.vmem %s358_s16, 1024  ;;  %p1705_p1 = scmp.lt.s32.totalorder %s358_s16, %s358_s16 }
  0x68   : > { %p1698_p9 = scmp.ne.s32.totalorder %s358_s16, %s1697_s17  ;;  %p1706_p2 = scmp.lt.s32.totalorder %s1697_s17, %s1697_s17 }
  0x6a   : > { %p1700_p12 = pnand %p1698_p9, %p2060_p13  ;;  %p1707_p4 = por %p1706_p2, %p1705_p1 }
  0x6c   : > { %p1701_p0 = pneg %p1700_p12 }
  0x6e   : > { %p1708_p8 = pnand %p1707_p4, %p1701_p0 }
  0x70   : > { %1711 = shalt.err (!%p1708_p8)
}
  0x71   : > { %s2464_s2 = smov 4   ;;  %s2465_s14 = smov 64  }
  0x72   : > { %1492 = dma.hbm_to_vmem [thread:$0]  (!%p2046_p11), %s2463_s6, 1024, %s358_s16, [#allocation9], %s2465_s14, %s2465_s14, %s2464_s2  }
  0x73   : > { %s2466_s8 = sld [smem:[#allocation29_spill]] }
  0x79   : > { %s1712_s26 = scalar_lea.hbm %s2466_s8, 1024 }
  0x7a   : > { %p1713_p6 = scmp.ne.s32.totalorder %s2466_s8, %s1712_s26  ;;  %p1719_p10 = scmp.lt.u32.totalorder %s1712_s26, %s2466_s8 }
  0x7c   : > { %p1715_p4 = pnand %p1713_p6, %p2060_p13 }
  0x7e   : > { %p1716_p8 = pneg %p1715_p4 }
  0x80   : > { %p1721_p3 = pnand %p1719_p10, %p1716_p8 }
  0x82   : > { %1724 = shalt.err (!%p1721_p3)
}
  0x83   : > { %s1725_s16 = scalar_lea.vmem %s2107_s29, 1024  ;;  %p1733_p12 = scmp.lt.s32.totalorder %s2107_s29, %s2107_s29 }
  0x84   : > { %p1726_p5 = scmp.ne.s32.totalorder %s2107_s29, %s1725_s16  ;;  %p1734_p0 = scmp.lt.s32.totalorder %s1725_s16, %s1725_s16 }
  0x86   : > { %p1728_p7 = pnand %p1726_p5, %p2060_p13  ;;  %p1735_p1 = por %p1734_p0, %p1733_p12 }
  0x88   : > { %p1729_p9 = pneg %p1728_p7 }
  0x8a   : > { %p1736_p2 = pnand %p1735_p1, %p1729_p9 }
  0x8c   : > { %1739 = shalt.err (!%p1736_p2)
}
  0x8d   : > { %1495 = dma.hbm_to_vmem [thread:$0]  (!%p2046_p11), %s2466_s8, 1024, %s2107_s29, [#allocation12], %s2465_s14, %s2465_s14, %s2464_s2  }
  0x8e   : > { %s2157_s28 = sadd.s32 1, %s1914_s20   ;;  %s43_s13 = sadd.s32 1, %s1910_s19 }
  0x8f   : > { %s40_s22 = ssub.s32 %s1914_s20, %s2157_s28  ;;  %p50_p6 = scmp.ne.s32.totalorder %s1910_s19, %s1906_s18 }
  0x90   : > { %p41_p13 = scmp.eq.s32.totalorder %s40_s22, 0  ;;  %p51_p4 = scmp.eq.s32.totalorder %s1914_s20, 0 }
  0x91   : > { %p2468_p10 = scmp.eq.s32.totalorder %s2016_s21, 1  ;;  %p1514_p5 = scmp.lt.s32.totalorder %s1914_s20, 2 }
  0x92   : > { %s2166_s24 = scalar_select %p41_p13, %s1910_s19, %s43_s13  }
  0x93   : > { %p52_p8 = por %p51_p4, %p50_p6  ;;  %p2170_p3 = por %p2468_p10, %p50_p6 }
  0x94   : > { %2467 = sst [smem:[#allocation25_spill]] %s2166_s24  ;;  %s390_s26 = sand.u32 1, %s1910_s19  }
  0x95   : > { %s1282_s12 = sshll.u32 %s390_s26, 3  ;;  %s1354_s29 = sshll.u32 %s1914_s20, 7 }
  0x96   : > { %s2180_s30 = scalar_lea.hbm %s2426_s0, %s1354_s29  ;;  %s394_s16 = scalar_lea.vmem [#allocation2], %s1282_s12 }
  0x97   : > { %s401_s17 = sshll.u32 %s394_s16, 4  ;;  %p2184_p11 = pnand %p1514_p5, %p52_p8  ;;  %s2182_s17 = int_to_ptr.vmem [resolvable:$true] %s401_s17 }
  0x98   : > { %s2191_s27 = scalar_lea.hbm %s2427_s1, %s1354_s29  ;;  %s415_s10 = scalar_lea.vmem [#allocation5], %s1282_s12 }
  0x99   : > { %s2193_s4 = sshll.u32 %s415_s10, 4  ;;  %s2195_s6 = scalar_lea.sflag [#allocation3], %s390_s26  ;;  %s2227_s4 = int_to_ptr.vmem [resolvable:$true] %s2193_s4 }
  0x9a   : > { %s1740_s16 = scalar_lea.hbm %s2180_s30, 128  ;;  %p1742_p9 = pneg %p2184_p11 }
  0x9b   : > { %p1741_p7 = scmp.ne.s32.totalorder %s2180_s30, %s1740_s16  ;;  %s1745_s22 = scalar_lea.hbm %s2426_s0, 256 }
  0x9c   : > { %p1746_p1 = scmp.lt.u32.totalorder %s2180_s30, %s2426_s0  ;;  %p1747_p2 = scmp.lt.u32.totalorder %s1745_s22, %s1740_s16 }
  0x9d   : > { %p1743_p12 = pnand %p1742_p9, %p1741_p7  ;;  %p1749_p6 = scmp.lt.u32.totalorder %s1740_s16, %s2180_s30 }
  0x9e   : > { %p1748_p13 = por %p1747_p2, %p1746_p1 }
  0x9f   : > { %p1744_p0 = pneg %p1743_p12 }
  0xa0   : > { %p1750_p4 = por %p1749_p6, %p1748_p13 }
  0xa2   : > { %p1751_p8 = pnand %p1750_p4, %p1744_p0 }
  0xa4   : > { %1754 = shalt.err (!%p1751_p8)
}
  0xa5   : > { %s1755_s26 = scalar_lea.vmem %s2182_s17, 128  ;;  %s1924_s8 = smov [#allocation2]  }
  0xa6   : > { %p1756_p10 = scmp.ne.s32.totalorder %s2182_s17, %s1755_s26  ;;  %s1760_s24 = sshll.u32 %s1924_s8, 4  ;;  %s1761_s24 = int_to_ptr.vmem [resolvable:$false] %s1760_s24 }
  0xa7   : > { %s1762_s12 = scalar_lea.vmem %s1761_s24, 256  ;;  %p1763_p12 = scmp.lt.s32.totalorder %s2182_s17, %s1761_s24 }
  0xa8   : > { %p1758_p5 = pnand %p1756_p10, %p1742_p9  ;;  %p1764_p1 = scmp.lt.s32.totalorder %s1762_s12, %s1755_s26 }
  0xaa   : > { %p1759_p7 = pneg %p1758_p5  ;;  %p1765_p2 = por %p1764_p1, %p1763_p12 }
  0xac   : > { %p1766_p13 = pnand %p1765_p2, %p1759_p7 }
  0xae   : > { %1769 = shalt.err (!%p1766_p13)
}
  0xaf   : > { %1499 = dma.hbm_to_vmem [thread:$0]  (!%p2184_p11), %s2180_s30, 128, %s2182_s17, %s2195_s6, %s2465_s14, %s2465_s14, %s2464_s2  }
  0xb0   : > { %s411_s10 = sand.u32 1, %s1914_s20   ;;  %s1770_s22 = scalar_lea.hbm %s2191_s27, 128 }
  0xb1   : > { %s2230_s16 = scalar_lea.sflag [#allocation6], %s411_s10  ;;  %p1771_p0 = scmp.ne.s32.totalorder %s2191_s27, %s1770_s22 }
  0xb2   : > { %s1775_s26 = scalar_lea.hbm %s2427_s1, 256  ;;  %p1776_p8 = scmp.lt.u32.totalorder %s2191_s27, %s2427_s1 }
  0xb3   : > { %p1773_p6 = pnand %p1771_p0, %p1742_p9  ;;  %p1777_p10 = scmp.lt.u32.totalorder %s1775_s26, %s1770_s22 }
  0xb4   : > { %p1779_p7 = scmp.lt.u32.totalorder %s1770_s22, %s2191_s27 }
  0xb5   : > { %p1774_p4 = pneg %p1773_p6  ;;  %p1778_p5 = por %p1777_p10, %p1776_p8 }
  0xb7   : > { %p1780_p12 = por %p1779_p7, %p1778_p5 }
  0xb9   : > { %p1781_p1 = pnand %p1780_p12, %p1774_p4 }
  0xbb   : > { %1784 = shalt.err (!%p1781_p1)
}
  0xbc   : > { %s1785_s6 = scalar_lea.vmem %s2227_s4, 128  ;;  %s1925_s30 = smov [#allocation5]  }
  0xbd   : > { %p1786_p2 = scmp.ne.s32.totalorder %s2227_s4, %s1785_s6  ;;  %s1790_s17 = sshll.u32 %s1925_s30, 4  ;;  %s1791_s17 = int_to_ptr.vmem [resolvable:$false] %s1790_s17 }
  0xbe   : > { %s1792_s12 = scalar_lea.vmem %s1791_s17, 256  ;;  %p1793_p6 = scmp.lt.s32.totalorder %s2227_s4, %s1791_s17 }
  0xbf   : > { %p1788_p13 = pnand %p1786_p2, %p1742_p9  ;;  %p1794_p8 = scmp.lt.s32.totalorder %s1792_s12, %s1785_s6 }
  0xc1   : > { %p1789_p0 = pneg %p1788_p13  ;;  %p1795_p10 = por %p1794_p8, %p1793_p6 }
  0xc3   : > { %p1796_p5 = pnand %p1795_p10, %p1789_p0 }
  0xc5   : > { %1799 = shalt.err (!%p1796_p5)
}
  0xc6   : > { %1502 = dma.hbm_to_vmem [thread:$0]  (!%p2184_p11), %s2191_s27, 128, %s2227_s4, %s2230_s16, %s2465_s14, %s2465_s14, %s2464_s2  }
  0xc7   : > { %p2471_p9 = scmp.ne.s32.totalorder %s2458_s25, 0 }
  0xc8   : > { %s2262_s10 = sand.u32 (!%p2471_p9), 1, %s1906_s18   ;;  %p2472_p4 = scmp.ne.s32.totalorder (!%p2471_p9), %s2455_s23, 0 }
  0xc9   : > { %434 = sbr.rel (%p2471_p9) target bundleno = 1198 (0x4ae), region = 60  ;;  %s2265_s22 = sshll.u32 (!%p2471_p9), %s2262_s10, 3 }
  0xca   : > { %s437_s9 = scalar_lea.sflag (!%p2471_p9), [#allocation3], %s2262_s10  ;;  %s440_s13 = scalar_lea.vmem (!%p2471_p9), [#allocation2], %s2265_s22 }
  0xd0   : > { %1873 = dma.done.wait (%p2472_p4), %s437_s9, 128  }
  0xd1   : > { %1875 = vsyncadd (%p2472_p4), %s437_s9, 4294967168  ;;  %s445_s4 = sand.u32 1, %s2016_s21   ;;  %s449_s2 = scalar_lea.vmem [#allocation5], %s2265_s22 }
  0xd2   : > { %s446_s25 = scalar_lea.sflag [#allocation6], %s445_s4 }
  0xd3   : > { %1877 = dma.done.wait (%p2472_p4), %s446_s25, 128  }
  0xd4   : > { %1879 = vsyncadd (%p2472_p4), %s446_s25, 4294967168  ;;  %p2473_p11 = scmp.eq.s32.totalorder %s2016_s21, 0 }
  0xd6   : > { %1881 = dma.done.wait (%p2473_p11), [#allocation6], 1024   ;;  %p2474_p7 = pmov %p2473_p11 }
  0xd8   : > { %1883 = vsyncadd (%p2474_p7), [#allocation6], 4294966272  ;;  %p2475_p12 = pmov %p2474_p7 }
  0xd9   : > { %p2476_p1 = pmov %p2474_p7 }
  0xda   : > { %1885 = dma.done.wait (%p2475_p12), [#allocation9], 3072  }
  0xdb   : > { %1887 = vsyncadd (%p2476_p1), [#allocation9], 4294964224  ;;  %p2477_p2 = pmov %p2476_p1 }
  0xdc   : > { %p2478_p13 = pmov %p2476_p1 }
  0xdd   : > { %1889 = dma.done.wait (%p2477_p2), [#allocation12], 1024  }
  0xde   : > { %1891 = vsyncadd (%p2478_p13), [#allocation12], 4294966272  ;;  %v1926_v0 = vmov 0.0   ;;  %vm1927_vm0 = vmmov 0   ;;  %v1567_v1 = vld [vmem:[#allocation7] sm:$0xff]   ;;  %v1568_v2 = vld [vmem:[#allocation7 + $0x8] sm:$0xff]   ;;  %v660_v51 = vlaneseq }
  0xdf   : > { %1399 = vmatprep.subr.bf16.mxu0 %v1926_v0  ;;  %1415 = vmatprep.mubr.msk.bf16.mxu0 %vm1927_vm0, %v1926_v0  ;;  %v1569_v3 = vld [vmem:[#allocation7 + $0x10] sm:$0xff]   ;;  %v1570_v4 = vld [vmem:[#allocation7 + $0x18] sm:$0xff]   ;;  %v1576_v5 = vld [vmem:[#allocation8 + $0x4] ss:$8 sps:$4 sm:$0xff]   ;;  %v1928_v26 = vmov 0   ;;  %s1296_s29 = sshll.u32 %s2262_s10, 4 }
  0xe0   : > { %1400 = vmatpush3.bf16.msra.mxu0 %v1567_v1  ;;  %v1578_v6 = vld [vmem:[#allocation8] ss:$8 sps:$4 sm:$0xff]   ;;  %750 = vmatprep.subr.bf16.mxu1 %v1576_v5  ;;  %v1579_v7 = vld [vmem:[#allocation8 + $0x14] ss:$8 sps:$4 sm:$0xff]   ;;  %v1581_v8 = vld [vmem:[#allocation8 + $0x10] ss:$8 sps:$4 sm:$0xff]  }
  0xe1   : > { %1401 = vmatprep.subr.bf16.mxu0 %v1926_v0  ;;  %751 = vmatpush1.bf16.msra.mxu1 %v1578_v6  ;;  %v1582_v9 = vld [vmem:[#allocation8 + $0x24] ss:$8 sps:$4 sm:$0xff]   ;;  %v1584_v12 = vld [vmem:[#allocation8 + $0x20] ss:$8 sps:$4 sm:$0xff]   ;;  %v1585_v13 = vld [vmem:[#allocation8 + $0x34] ss:$8 sps:$4 sm:$0xff]  }
  0xe2   : > { %752 = vmatprep.subr.bf16.mxu1 %v1579_v7  ;;  %v1571_v10 = vld [vmem:[#allocation7 + $0x20] sm:$0xff]   ;;  %v1572_v11 = vld [vmem:[#allocation7 + $0x28] sm:$0xff]   ;;  %v1587_v14 = vld [vmem:[#allocation8 + $0x30] ss:$8 sps:$4 sm:$0xff]   ;;  %782 = vmatprep.mubr.bf16.mxu1 %v1928_v26  ;;  %v661_v52 = vshrl.u32 %v660_v51, 7  ;;  %s2329_s26 = scalar_lea.vmem [#allocation14], %s1296_s29 }
  0xe3   : > { %v1588_v15 = vld [vmem:[#allocation8 + $0x44] ss:$8 sps:$4 sm:$0xff]   ;;  %v1573_v16 = vld [vmem:[#allocation7 + $0x30] sm:$0xff]   ;;  %v1590_v17 = vld [vmem:[#allocation8 + $0x40] ss:$8 sps:$4 sm:$0xff]   ;;  %s1109_s6 = sshll.u32 %s2329_s26, 4  ;;  %s2340_s6 = int_to_ptr.vmem [resolvable:$true] %s1109_s6 }
  0xe4   : > { %1402 = vmatpush3.bf16.msra.mxu0 %v1568_v2  ;;  %v1591_v18 = vld [vmem:[#allocation8 + $0x54] ss:$8 sps:$4 sm:$0xff]   ;;  %v1593_v20 = vld [vmem:[#allocation8 + $0x50] ss:$8 sps:$4 sm:$0xff]   ;;  %v1575_v21 = vld [vmem:[%s440_s13] sm:$0xff]   ;;  %v662_v53 = vsub.s32 0, %v661_v52 }
  0xe5   : > { %1403 = vmatprep.subr.bf16.mxu0 %v1926_v0  ;;  %753 = vmatpush1.bf16.msra.mxu1 %v1581_v8  ;;  %v1574_v19 = vld [vmem:[#allocation7 + $0x38] sm:$0xff]   ;;  %v1594_v22 = vld [vmem:[#allocation8 + $0x64] ss:$8 sps:$4 sm:$0xff]   ;;  %v1596_v23 = vld [vmem:[#allocation8 + $0x60] ss:$8 sps:$4 sm:$0xff]   ;;  %v666_v55 = vsub.s32 1, %v661_v52 }
  0xe6   : > { %754 = vmatprep.subr.bf16.mxu1 %v1582_v9  ;;  %v1597_v24 = vld [vmem:[#allocation8 + $0x74] ss:$8 sps:$4 sm:$0xff]   ;;  %v1599_v25 = vld [vmem:[#allocation8 + $0x70] ss:$8 sps:$4 sm:$0xff]   ;;  %v1600_v27 = vld [vmem:[#allocation10] sm:$0xff]   ;;  %s1362_s30 = sshll.u32 %s2016_s21, 8 }
  0xe7   : > { %v1297_v28 = vld [vmem:[%s2429_s3] ss:$0 sm:$0xff]  ;;  %v1601_v38 = vld [vmem:[#allocation10 + $0x8] sm:$0xff]   ;;  %v1602_v39 = vld [vmem:[#allocation10 + $0x10] sm:$0xff]   ;;  %s2346_s9 = scalar_lea.hbm %s2437_s11, %s1362_s30  ;;  %s1079_s13 = scalar_lea.sflag [#allocation15], %s2262_s10 }
  0xe8   : > { %1404 = vmatpush3.bf16.msra.mxu0 %v1569_v3  ;;  %v1603_v40 = vld [vmem:[#allocation10 + $0x18] sm:$0xff]   ;;  %v1604_v41 = vld [vmem:[#allocation10 + $0x20] sm:$0xff]   ;;  %v1605_v42 = vld [vmem:[#allocation10 + $0x28] sm:$0xff]   ;;  %s1800_s4 = scalar_lea.vmem %s2340_s6, 256  ;;  %s1929_s25 = smov [#allocation14]  }
  0xe9   : > { %1405 = vmatprep.subr.bf16.mxu0 %v1926_v0  ;;  %755 = vmatpush1.bf16.msra.mxu1 %v1584_v12  ;;  %v1606_v43 = vld [vmem:[#allocation10 + $0x30] sm:$0xff]   ;;  %v1607_v44 = vld [vmem:[#allocation10 + $0x38] sm:$0xff]   ;;  %v1608_v45 = vld [vmem:[#allocation11] sm:$0xff]   ;;  %p1801_p0 = scmp.ne.s32.totalorder %s2340_s6, %s1800_s4 }
  0xea   : > { %756 = vmatprep.subr.bf16.mxu1 %v1585_v13  ;;  %v1609_v46 = vld [vmem:[#allocation11 + $0x8] sm:$0xff]   ;;  %v1610_v47 = vld [vmem:[#allocation11 + $0x10] sm:$0xff]   ;;  %v1611_v48 = vld [vmem:[#allocation11 + $0x18] sm:$0xff]  }
  0xeb   : > { %v1612_v49 = vld [vmem:[#allocation11 + $0x20] sm:$0xff]   ;;  %v1613_v50 = vld [vmem:[#allocation11 + $0x28] sm:$0xff]   ;;  %v1364_v9 = vld [vmem:[%s449_s2] sm:$0xff]   ;;  %p1802_p6 = pnand %p1801_p0, %p2170_p3  ;;  %s1804_s2 = sshll.u32 %s1929_s25, 4  ;;  %s1805_s2 = int_to_ptr.vmem [resolvable:$false] %s1804_s2 }
  0xec   : > { %1406 = vmatpush3.bf16.msra.mxu0 %v1570_v4  ;;  %v658_v54 = vld [vmem:[%s2431_s5] sm:$0x3]  ;;  %s1806_s23 = scalar_lea.vmem %s1805_s2, 512  ;;  %p1807_p10 = scmp.lt.s32.totalorder %s2340_s6, %s1805_s2 }
  0xed   : > { %1407 = vmatprep.subr.bf16.mxu0 %v1926_v0  ;;  %757 = vmatpush1.bf16.msra.mxu1 %v1587_v14  ;;  %v663_v56 = vrot.slane %v658_v54, %v662_v53  ;;  %v667_v57 = vrot.slane %v658_v54, %v666_v55  ;;  %p1803_p8 = pneg %p1802_p6  ;;  %p1808_p5 = scmp.lt.s32.totalorder %s1806_s23, %s1800_s4 }
  0xee   : > { %758 = vmatprep.subr.bf16.mxu1 %v1588_v15 }
  0xef   : > { %p1809_p9 = por %p1808_p5, %p1807_p10 }
  0xf0   : > { %1408 = vmatpush3.bf16.msra.mxu0 %v1571_v10  ;;  %v1365_v10 = vunpack.c.l.bf16 %v1364_v9 }
  0xf1   : > { %1409 = vmatprep.subr.bf16.mxu0 %v1926_v0  ;;  %759 = vmatpush1.bf16.msra.mxu1 %v1590_v17  ;;  %p1810_p4 = pnand %p1809_p9, %p1803_p8 }
  0xf2   : > { %760 = vmatprep.subr.bf16.mxu1 %v1591_v18 }
  0xf4   : > { %1410 = vmatpush3.bf16.msra.mxu0 %v1572_v11  ;;  %v1366_v11 = vunpack.c.h.bf16 %v1364_v9 }
  0xf5   : > { %1411 = vmatprep.subr.bf16.mxu0 %v1926_v0  ;;  %761 = vmatpush1.bf16.msra.mxu1 %v1593_v20  ;;  %v1615_v20 = vld [vmem:[#allocation11 + $0x38] sm:$0xff]  }
  0xf6   : > { %762 = vmatprep.subr.bf16.mxu1 %v1594_v22 }
  0xf8   : > { %1412 = vmatpush3.bf16.msra.mxu0 %v1573_v16 }
  0xf9   : > { %1413 = vmatprep.subr.bf16.mxu0 %v1926_v0  ;;  %763 = vmatpush1.bf16.msra.mxu1 %v1596_v23 }
  0xfa   : > { %764 = vmatprep.subr.bf16.mxu1 %v1597_v24 }
  0xfc   : > { %1414 = vmatpush3.bf16.msra.mxu0 %v1574_v19  ;;  %v1614_v19 = vld [vmem:[#allocation11 + $0x30] sm:$0xff]  }
  0xfd   : > { %1419 = vmatprep.subr.bf16.mxu0 %v1926_v0  ;;  %765 = vmatpush1.bf16.msra.mxu1 %v1599_v25 }
  0xfe   : > { %1439 = vmatprep.subr.bf16.mxu1 %v1926_v0 }
  0xff   : > { %1416 = vmatmul.mubr.bf16.vlgmr.msra.gmra.mrb[0].mxu0 %v1575_v21  ;;  %v1323_v21 = vld [vmem:[%s2433_s7] ss:$0 sm:$0xff] }
 0x100   : > { %1435 = vmatprep.mubr.msk.bf16.mxu0 %vm1927_vm0, %v1926_v0  ;;  %1420 = vmatpush3.bf16.msra.mxu0 %v1600_v27 }
 0x101   : > { %1421 = vmatprep.subr.bf16.mxu0 %v1926_v0 }
 0x104   : > { %1422 = vmatpush3.bf16.msra.mxu0 %v1601_v38 }
 0x105   : > { %1423 = vmatprep.subr.bf16.mxu0 %v1926_v0 }
 0x108   : > { %1424 = vmatpush3.bf16.msra.mxu0 %v1602_v39 }
 0x109   : > { %1425 = vmatprep.subr.bf16.mxu0 %v1926_v0 }
 0x10c   : > { %1426 = vmatpush3.bf16.msra.mxu0 %v1603_v40 }
 0x10d   : > { %1427 = vmatprep.subr.bf16.mxu0 %v1926_v0 }
 0x110   : > { %1428 = vmatpush3.bf16.msra.mxu0 %v1604_v41 }
 0x111   : > { %1429 = vmatprep.subr.bf16.mxu0 %v1926_v0 }
 0x114   : > { %1430 = vmatpush3.bf16.msra.mxu0 %v1605_v42 }
 0x115   : > { %1431 = vmatprep.subr.bf16.mxu0 %v1926_v0 }
 0x118   : > { %1432 = vmatpush3.bf16.msra.mxu0 %v1606_v43 }
 0x119   : > { %1433 = vmatprep.subr.bf16.mxu0 %v1926_v0 }
 0x11c   : > { %1434 = vmatpush3.bf16.msra.mxu0 %v1607_v44 }
 0x1d2   : > { %v632_v29 = vpop.f32.mrb[0].mxu0 }
 0x1d3   : > { %v633_v30 = vadd.f32 %v1297_v28, %v632_v29  ;;  %v1417_v31 = vpop.f32.mrb[1].mxu0 }
 0x1d4   : > { %v635_v32 = vpop.f32.mrb[2].mxu0 }
 0x1d5   : > { %v636_v33 = vadd.f32 %v1297_v28, %v635_v32  ;;  %v1418_v34 = vpop.f32.mrb[3].mxu0  ;;  %v639_v35 = vmax.f32 %v633_v30, 0.0 }
 0x1d7   : > { %v640_v36 = vmax.f32 %v636_v33, 0.0 }
 0x1d9   : > { %v641_v37 = vpack.c.bf16 %v640_v36, %v639_v35 }
 0x1db   : > { %783 = vmatmul.mubr.bf16.vlgmr.msra.gmra.mrb[0].mxu1 %v641_v37 }
 0x1dc   : > { %1455 = vmatprep.mubr.msk.bf16.mxu1 %vm1927_vm0, %v1926_v0  ;;  %1440 = vmatpush3.bf16.msra.mxu1 %v1608_v45 }
 0x1dd   : > { %1441 = vmatprep.subr.bf16.mxu1 %v1926_v0 }
 0x1e0   : > { %1442 = vmatpush3.bf16.msra.mxu1 %v1609_v46 }
 0x1e1   : > { %1443 = vmatprep.subr.bf16.mxu1 %v1926_v0 }
 0x1e4   : > { %1444 = vmatpush3.bf16.msra.mxu1 %v1610_v47 }
 0x1e5   : > { %1445 = vmatprep.subr.bf16.mxu1 %v1926_v0 }
 0x1e8   : > { %1446 = vmatpush3.bf16.msra.mxu1 %v1611_v48 }
 0x1e9   : > { %1447 = vmatprep.subr.bf16.mxu1 %v1926_v0 }
 0x1ec   : > { %1448 = vmatpush3.bf16.msra.mxu1 %v1612_v49 }
 0x1ed   : > { %1449 = vmatprep.subr.bf16.mxu1 %v1926_v0 }
 0x1f0   : > { %1450 = vmatpush3.bf16.msra.mxu1 %v1613_v50 }
 0x1f1   : > { %1451 = vmatprep.subr.bf16.mxu1 %v1926_v0 }
 0x1f4   : > { %1452 = vmatpush3.bf16.msra.mxu1 %v1614_v19 }
 0x1f5   : > { %1453 = vmatprep.subr.bf16.mxu1 %v1926_v0 }
 0x1f8   : > { %1454 = vmatpush3.bf16.msra.mxu1 %v1615_v20 }
 0x2ae   : > { %v784_v58 = vpop.f32.mrb[0].mxu1 }
 0x2af   : > { %v785_v59 = vadd.f32 %v784_v58, %v663_v56  ;;  %v786_v60 = vpop.f32.mrb[1].mxu1 }
 0x2b0   : > { %v787_v61 = vadd.f32 %v786_v60, %v667_v57  ;;  %v788_v62 = vpop.f32.mrb[2].mxu1 }
 0x2b1   : > { %v789_v63 = vadd.f32 %v788_v62, %v663_v56  ;;  %v790_v1 = vpop.f32.mrb[3].mxu1 }
 0x2b2   : > { %v793_v2 = vmul.f32 0.5, %v787_v61  ;;  %v1358_v3 = vpack.c.bf16 %v787_v61, %v785_v59  ;;  %v791_v4 = vadd.f32 %v790_v1, %v667_v57 }
 0x2b4   : > { %v795_v5 = vmul.f32 1.442695, %v793_v2  ;;  %1071 = vst [vmem:[%s2329_s26] sm:$0xff] %v1358_v3  ;;  %v794_v6 = vmul.f32 0.5, %v791_v4  ;;  %v1359_v7 = vpack.c.bf16 %v791_v4, %v789_v63 }
 0x2b6   : > { %1616 = vpow2.f32 %v795_v5  ;;  %v797_v8 = vmul.f32 1.442695, %v794_v6  ;;  %1072 = vst [vmem:[%s2329_s26 + $0x8] sm:$0xff] %v1359_v7 }
 0x2b8   : > { %1618 = vpow2.f32 %v797_v8 }
 0x2c0   : > { %v1617_v12 = vpop.eup %1616 }
 0x2c1   : > { %v803_v13 = vmul.f32 %v1617_v12, %v1365_v10 }
 0x2c2   : > { %v1619_v14 = vpop.eup %1618 }
 0x2c3   : > { %v804_v15 = vmul.f32 %v1619_v14, %v1366_v11  ;;  %v805_v16 = vadd.f32 %v803_v13, %v785_v59 }
 0x2c5   : > { %v806_v17 = vadd.f32 %v804_v15, %v789_v63 }
 0x2c7   : > { %v807_v18 = vpack.c.bf16 %v806_v17, %v805_v16 }
 0x2c9   : > { %1436 = vmatmul.mubr.bf16.vlgmr.msra.gmra.mrb[4].mxu0 %v807_v18 }
 0x39c   : > { %v913_v22 = vpop.f32.mrb[4].mxu0 }
 0x39d   : > { %v914_v23 = vadd.f32 %v1323_v21, %v913_v22  ;;  %v1437_v24 = vpop.f32.mrb[5].mxu0 }
 0x39e   : > { %v916_v25 = vpop.f32.mrb[6].mxu0 }
 0x39f   : > { %v917_v26 = vadd.f32 %v1323_v21, %v916_v25  ;;  %v1438_v27 = vpop.f32.mrb[7].mxu0  ;;  %v920_v28 = vmax.f32 %v914_v23, 0.0 }
 0x3a1   : > { %v921_v29 = vmax.f32 %v917_v26, 0.0 }
 0x3a3   : > { %v922_v30 = vpack.c.bf16 %v921_v29, %v920_v28 }
 0x3a5   : > { %1456 = vmatmul.mubr.bf16.vlgmr.msra.gmra.mrb[4].mxu1 %v922_v30 }
 0x3a6   : > { %1813 = shalt.err (!%p1810_p4)
}
 0x3a7   : > { %s1814_s14 = scalar_lea.hbm %s2346_s9, 256  ;;  %s1818_s29 = scalar_lea.hbm %s2437_s11, 512 }
 0x3a8   : > { %p1815_p11 = scmp.ne.s32.totalorder %s2346_s9, %s1814_s14  ;;  %p1819_p1 = scmp.lt.u32.totalorder %s2346_s9, %s2437_s11 }
 0x3a9   : > { %p1820_p2 = scmp.lt.u32.totalorder %s1818_s29, %s1814_s14  ;;  %p1822_p0 = scmp.lt.u32.totalorder %s1814_s14, %s2346_s9 }
 0x3aa   : > { %p1816_p7 = pnand %p1815_p11, %p2170_p3 }
 0x3ab   : > { %p1821_p13 = por %p1820_p2, %p1819_p1 }
 0x3ac   : > { %p1817_p12 = pneg %p1816_p7 }
 0x3ad   : > { %p1823_p6 = por %p1822_p0, %p1821_p13 }
 0x3af   : > { %p1824_p8 = pnand %p1823_p6, %p1817_p12 }
 0x3b1   : > { %1827 = shalt.err (!%p1824_p8)
}
 0x3b2   : > { %s1930_s24 = smov 128   ;;  %s1931_s30 = smov 8  }
 0x3b3   : > { %1480 = dma.vmem_to_hbm [thread:$0]  (%p2170_p3), %s2340_s6, 256, %s2346_s9, %s1079_s13, %s1930_s24, %s1930_s24, %s1931_s30  }
 0x3b4   : > { %s2479_s4 = sld [smem:[#allocation30_spill]]  ;;  %s1360_s6 = sshll.u32 %s2016_s21, 7 }
 0x3b5   : > { %s506_s9 = scalar_lea.vmem [#allocation13], %s2265_s22  ;;  %s2480_s23 = sld [smem:[#allocation31_spill]] }
 0x3b6   : > { %s1092_s13 = sshll.u32 %s506_s9, 4  ;;  %s1074_s27 = scalar_lea.sflag [#allocation4], %s2262_s10  ;;  %s2382_s13 = int_to_ptr.vmem [resolvable:$true] %s1092_s13 }
 0x3b7   : > { %s1828_s16 = scalar_lea.vmem %s2382_s13, 128  ;;  %s1932_s21 = smov [#allocation13]  }
 0x3b8   : > { %p1829_p10 = scmp.ne.s32.totalorder %s2382_s13, %s1828_s16  ;;  %s1832_s22 = sshll.u32 %s1932_s21, 4  ;;  %s1833_s22 = int_to_ptr.vmem [resolvable:$false] %s1832_s22 }
 0x3b9   : > { %s1834_s29 = scalar_lea.vmem %s1833_s22, 256  ;;  %p1835_p4 = scmp.lt.s32.totalorder %s2382_s13, %s1833_s22 }
 0x3ba   : > { %v1332_v0 = vld [vmem:[%s2479_s4] ss:$0 sm:$0xff]  ;;  %p1830_p5 = pnand %p1829_p10, %p2170_p3  ;;  %p1836_p11 = scmp.lt.s32.totalorder %s1834_s29, %s1828_s16 }
 0x3bb   : > { %s2380_s14 = scalar_lea.hbm %s2480_s23, %s1360_s6 }
 0x3bc   : > { %p1831_p9 = pneg %p1830_p5  ;;  %p1837_p7 = por %p1836_p11, %p1835_p4 }
 0x3be   : > { %p1838_p12 = pnand %p1837_p7, %p1831_p9 }
 0x478   : > { %v1028_v31 = vpop.f32.mrb[4].mxu1 }
 0x479   : > { %v1029_v32 = vadd.f32 %v1332_v0, %v1028_v31  ;;  %v1457_v33 = vpop.f32.mrb[5].mxu1 }
 0x47a   : > { %v1031_v34 = vpop.f32.mrb[6].mxu1 }
 0x47b   : > { %v1035_v35 = vsub.f32 0.0, %v1029_v32  ;;  %v1032_v36 = vadd.f32 %v1332_v0, %v1031_v34  ;;  %v1458_v37 = vpop.f32.mrb[7].mxu1 }
 0x47d   : > { %v1037_v38 = vmul.f32 1.442695, %v1035_v35  ;;  %v1036_v39 = vsub.f32 0.0, %v1032_v36 }
 0x47f   : > { %1620 = vpow2.f32 %v1037_v38  ;;  %v1039_v40 = vmul.f32 1.442695, %v1036_v39 }
 0x481   : > { %1622 = vpow2.f32 %v1039_v40 }
 0x489   : > { %v1621_v41 = vpop.eup %1620 }
 0x48a   : > { %v1041_v42 = vadd.f32 1.0, %v1621_v41 }
 0x48b   : > { %v1623_v43 = vpop.eup %1622 }
 0x48c   : > { %1624 = vrcp.f32 %v1041_v42  ;;  %v1042_v44 = vadd.f32 1.0, %v1623_v43 }
 0x48e   : > { %1626 = vrcp.f32 %v1042_v44 }
 0x496   : > { %v1625_v45 = vpop.eup %1624 }
 0x497   : > { %v1045_v46 = vmax.f32 %v1625_v45, 0.0 }
 0x498   : > { %v1627_v47 = vpop.eup %1626 }
 0x499   : > { %v1046_v48 = vmax.f32 %v1627_v47, 0.0  ;;  %v1047_v49 = vmin.f32 %v1045_v46, 1.0 }
 0x49b   : > { %v1048_v50 = vmin.f32 %v1046_v48, 1.0 }
 0x49d   : > { %v1370_v51 = vpack.c.bf16 %v1048_v50, %v1047_v49 }
 0x49f   : > { %1371 = vst [vmem:[%s506_s9] sm:$0xff] %v1370_v51  }
 0x4a0   : > { %1841 = shalt.err (!%p1838_p12)
}
 0x4a1   : > { %s1842_s26 = scalar_lea.hbm %s2380_s14, 128  ;;  %s1846_s30 = scalar_lea.hbm %s2480_s23, 256 }
 0x4a2   : > { %p1843_p1 = scmp.ne.s32.totalorder %s2380_s14, %s1842_s26  ;;  %p1847_p0 = scmp.lt.u32.totalorder %s2380_s14, %s2480_s23 }
 0x4a3   : > { %p1848_p6 = scmp.lt.u32.totalorder %s1846_s30, %s1842_s26  ;;  %p1850_p10 = scmp.lt.u32.totalorder %s1842_s26, %s2380_s14 }
 0x4a4   : > { %p1844_p2 = pnand %p1843_p1, %p2170_p3 }
 0x4a5   : > { %p1849_p8 = por %p1848_p6, %p1847_p0 }
 0x4a6   : > { %p1845_p13 = pneg %p1844_p2 }
 0x4a7   : > { %p1851_p5 = por %p1850_p10, %p1849_p8 }
 0x4a9   : > { %p1852_p9 = pnand %p1851_p5, %p1845_p13 }
 0x4ab   : > { %1855 = shalt.err (!%p1852_p9)
}
 0x4ac   : > { %s1933_s4 = smov 64   ;;  %s1934_s6 = smov 4  }
 0x4ad   : > { %1479 = dma.vmem_to_hbm [thread:$0]  (%p2170_p3), %s2382_s13, 128, %s2380_s14, %s1074_s27, %s1933_s4, %s1933_s4, %s1934_s6  }
 0x4ae PF: > { %s2481_s9 = sld [smem:[#allocation23_spill]]  ;;  %s2482_s25 = sld [smem:[#allocation24_spill]] }
 0x4af   : > { %p2484_p11 = scmp.ge.s32.totalorder %s1914_s20, 2 }
 0x4b4   : > { %s1124_s2 = sand.u32 1, %s2481_s9   ;;  %p2483_p4 = scmp.ne.s32.totalorder %s2482_s25, 0 }
 0x4b5   : > { %s1125_s16 = scalar_lea.sflag [#allocation4], %s1124_s2 }
 0x4b6   : > { %p1504_p7 = pnand %p2484_p11, %p2483_p4 }
 0x4b8   : > { %1893 = dma.done.wait (!%p1504_p7), %s1125_s16, 128  }
 0x4b9   : > { %1895 = vsyncadd (!%p1504_p7), %s1125_s16, 4294967168  ;;  %s1134_s21 = scalar_lea.sflag [#allocation15], %s1124_s2 }
 0x4ba   : > { %1897 = dma.done.wait (!%p1504_p7), %s1134_s21, 256  }
 0x4bb   : > { %1899 = vsyncadd (!%p1504_p7), %s1134_s21, 4294967040  ;;  %s2485_s15 = sld [smem:[#allocation25_spill]]  ;;  %p33_p3 = scmp.ge.s32.totalorder %s2157_s28, 4  }
 0x4bc   : > { %s2486_s17 = smov %s1906_s18  ;;  %s2487_s18 = smov %s1910_s19 }
 0x4bd   : > { %s2489_s20 = smov %s2157_s28  ;;  %35 = sbr.rel (!%p33_p3) target bundleno = 18 (0x12), region = 151 }
 0x4c1   : > { %s2488_s19 = smov %s2485_s15 }
 0x4c4   :  { %1139 = vsyncpa [#allocation3], 1 }
 0x4c5   :  { %1141 = vsyncpa [#allocation3 + $0x1], 1 }
 0x4c6   :  { %1142 = vsyncpa [#allocation6], 1 }
 0x4c7   :  { %1144 = vsyncpa [#allocation6 + $0x1], 1 }
 0x4c8   :  { %1145 = vsyncpa [#allocation9], 1 }
 0x4c9   :  { %1146 = vsyncpa [#allocation12], 1 }
 0x4ca   :  { %1147 = vsyncpa [#allocation4], 1 }
 0x4cb   :  { %1149 = vsyncpa [#allocation4 + $0x1], 1 }
 0x4cc   :  { %1150 = vsyncpa [#allocation15], 1 }
 0x4cd   :  { %1152 = vsyncpa [#allocation15 + $0x1], 1 }

// kernel: tpu_custom_call.1
= control target key start
LH: loop header
LB: loop body
LE: loop exit
PB: predicated region body
PF: predicated region fallthrough
CT: control target
= control target key end

     0   :  { %s2426_s0 = inlined_call_operand.hbm [shape: bf16[32,128], index: 0, kind: input, shape index: {}]   ;;  %s2427_s1 = inlined_call_operand.hbm [shape: bf16[32,128], index: 1, kind: input, shape index: {}]   ;;  %s2428_s2 = inlined_call_operand.hbm [shape: bf16[128,128], index: 2, kind: input, shape index: {}]   ;;  %s2429_s3 = inlined_call_operand.vmem [shape: f32[1,128], index: 3, kind: input, shape index: {}]   ;;  %s2430_s4 = inlined_call_operand.hbm [shape: bf16[128,256], index: 4, kind: input, shape index: {}]   ;;  %s2431_s5 = inlined_call_operand.vmem [shape: f32[1,256], index: 5, kind: input, shape index: {}]   ;;  %s2432_s6 = inlined_call_operand.hbm [shape: bf16[128,128], index: 6, kind: input, shape index: {}]   ;;  %s2433_s7 = inlined_call_operand.vmem [shape: f32[1,128], index: 7, kind: input, shape index: {}]   ;;  %s2434_s8 = inlined_call_operand.hbm [shape: bf16[128,128], index: 8, kind: input, shape index: {}]   ;;  %s2435_s9 = inlined_call_operand.vmem [shape: f32[1,128], index: 9, kind: input, shape index: {}]   ;;  %s2436_s10 = inlined_call_operand.hbm [shape: bf16[32,128], index: 10, kind: output, shape index: {0}]   ;;  %s2437_s11 = inlined_call_operand.hbm [shape: bf16[32,256], index: 11, kind: output, shape index: {1}]  }
   0x1   :  { %2448 = sst [smem:[#allocation26_spill]] %s2428_s2 }
   0x2   :  { %2449 = sst [smem:[#allocation27_spill]] %s2430_s4 }
   0x3   :  { %2450 = sst [smem:[#allocation28_spill]] %s2432_s6 }
   0x4   :  { %2451 = sst [smem:[#allocation29_spill]] %s2434_s8 }
   0x5   :  { %2452 = sst [smem:[#allocation30_spill]] %s2435_s9 }
   0x6   :  { %2453 = sst [smem:[#allocation31_spill]] %s2436_s10 }
   0x7   :  { %17 = vsyncpa [#allocation3], 0 }
   0x8   :  { %19 = vsyncpa [#allocation3 + $0x1], 0 }
   0x9   :  { %20 = vsyncpa [#allocation6], 0 }
   0xa   :  { %22 = vsyncpa [#allocation6 + $0x1], 0 }
   0xb   :  { %23 = vsyncpa [#allocation9], 0 }
   0xc   :  { %24 = vsyncpa [#allocation12], 0 }
   0xd   :  { %25 = vsyncpa [#allocation4], 0 }
   0xe   :  { %27 = vsyncpa [#allocation4 + $0x1], 0 }
   0xf   :  { %28 = vsyncpa [#allocation15], 0 }
  0x10   :  { %30 = vsyncpa [#allocation15 + $0x1], 0  ;;  %s1995_s17 = smov 0   ;;  %s1997_s18 = smov 0  }
  0x11   :  { %s1999_s19 = smov 0   ;;  %s2001_s20 = smov 0  }
  0x12 LB: > { %2454 = sst [smem:[#allocation23_spill]] %s1902_s17  ;;  %s2016_s21 = sadd.s32 4294967295, %s1914_s20   ;;  %s1914_s20 = sphi %s2001_s20, %s2489_s20   ;;  %s1910_s19 = sphi %s1999_s19, %s2488_s19   ;;  %s1906_s18 = sphi %s1997_s18, %s2487_s18   ;;  %s1902_s17 = sphi %s1995_s17, %s2486_s17  }
  0x13   : > { %s1275_s22 = sadd.s32 4294967294, %s1914_s20   ;;  %p56_p0 = scmp.ne.s32.totalorder %s1906_s18, %s1902_s17 }
  0x14   : > { %p2438_p1 = scmp.eq.s32.totalorder %s2016_s21, 0  ;;  %p280_p3 = scmp.eq.s32.totalorder %s1275_s22, 1 }
  0x15   : > { %p1276_p5 = scmp.ge.s32.totalorder %s1914_s20, 1  ;;  %p313_p7 = scmp.lt.s32.totalorder %s1914_s20, 3 }
  0x16   : > { %p2025_p4 = por %p2438_p1, %p56_p0  ;;  %p2030_p6 = por %p280_p3, %p56_p0 }
  0x17   : > { %p2035_p8 = pnand %p1276_p5, %p313_p7  ;;  %s1916_s26 = smov [#allocation7]  }
  0x18   : > { %s2455_s23 = scalar_select %p2025_p4, 1, 0 }
  0x19   : > { %s2456_s24 = scalar_select %p2030_p6, 1, 0 }
  0x1a   : > { %s2458_s25 = scalar_select %p2035_p8, 1, 0 }
  0x1b   : > { %2457 = sst [smem:[#allocation24_spill]] %s2456_s24  ;;  %s325_s27 = sshll.u32 %s1916_s26, 4  ;;  %s2039_s27 = int_to_ptr.vmem [resolvable:$true] %s325_s27 }
  0x1c   : > { %p1483_p9 = pneg %p2035_p8  ;;  %s1917_s29 = smov [#allocation8]  }
  0x1d   : > { %s341_s30 = sshll.u32 %s1917_s29, 4  ;;  %s2460_s2 = sld [smem:[#allocation26_spill]]  ;;  %s2050_s30 = int_to_ptr.vmem [resolvable:$true] %s341_s30 }
  0x1e   : > { %p2046_p11 = pnand %p1483_p9, %p2438_p1 }
  0x20   : > { %p2060_p13 = pneg %p2046_p11 }
  0x23   : > { %s1628_s14 = scalar_lea.hbm %s2460_s2, 1024 }
  0x24   : > { %p1629_p12 = scmp.ne.s32.totalorder %s2460_s2, %s1628_s14  ;;  %p1635_p5 = scmp.lt.u32.totalorder %s1628_s14, %s2460_s2 }
  0x26   : > { %p1631_p0 = pnand %p2060_p13, %p1629_p12 }
  0x28   : > { %p1632_p3 = pneg %p1631_p0 }
  0x2a   : > { %p1637_p7 = pnand %p1635_p5, %p1632_p3 }
  0x2c   : > { %1640 = shalt.err (!%p1637_p7)
}
  0x2d   : > { %s1641_s12 = scalar_lea.vmem %s2039_s27, 1024  ;;  %p1649_p2 = scmp.lt.s32.totalorder %s2039_s27, %s2039_s27 }
  0x2e   : > { %p1642_p9 = scmp.ne.s32.totalorder %s2039_s27, %s1641_s12  ;;  %p1650_p6 = scmp.lt.s32.totalorder %s1641_s12, %s1641_s12 }
  0x30   : > { %p1644_p10 = pnand %p1642_p9, %p2060_p13  ;;  %p1651_p12 = por %p1650_p6, %p1649_p2 }
  0x32   : > { %p1645_p1 = pneg %p1644_p10 }
  0x34   : > { %p1652_p0 = pnand %p1651_p12, %p1645_p1 }
  0x36   : > { %1655 = shalt.err (!%p1652_p0)
}
  0x37   : > { %s2442_s13 = smov 64   ;;  %s2444_s14 = smov 4  }
  0x38   : > { %1486 = dma.hbm_to_vmem [thread:$0]  (!%p2046_p11), %s2460_s2, 1024, %s2039_s27, [#allocation6], %s2442_s13, %s2442_s13, %s2444_s14  }
  0x39   : > { %s2462_s4 = sld [smem:[#allocation27_spill]] }
  0x3f   : > { %s1656_s12 = scalar_lea.hbm %s2462_s4, 2048 }
  0x40   : > { %p1657_p1 = scmp.ne.s32.totalorder %s2462_s4, %s1656_s12  ;;  %p1663_p10 = scmp.lt.u32.totalorder %s1656_s12, %s2462_s4 }
  0x42   : > { %p1659_p2 = pnand %p1657_p1, %p2060_p13 }
  0x44   : > { %p1660_p6 = pneg %p1659_p2 }
  0x46   : > { %p1665_p3 = pnand %p1663_p10, %p1660_p6 }
  0x48   : > { %1668 = shalt.err (!%p1665_p3)
}
  0x49   : > { %s1669_s27 = scalar_lea.vmem %s2050_s30, 2048  ;;  %p1677_p12 = scmp.lt.s32.totalorder %s2050_s30, %s2050_s30 }
  0x4a   : > { %p1670_p5 = scmp.ne.s32.totalorder %s2050_s30, %s1669_s27  ;;  %p1678_p0 = scmp.lt.s32.totalorder %s1669_s27, %s1669_s27 }
  0x4c   : > { %p1672_p7 = pnand %p1670_p5, %p2060_p13  ;;  %p1679_p1 = por %p1678_p0, %p1677_p12 }
  0x4e   : > { %p1673_p9 = pneg %p1672_p7 }
  0x50   : > { %p1680_p2 = pnand %p1679_p1, %p1673_p9 }
  0x52   : > { %1683 = shalt.err (!%p1680_p2)
}
  0x53   : > { %s1920_s17 = smov 128   ;;  %s1921_s9 = smov 8  }
  0x54   : > { %1489 = dma.hbm_to_vmem [thread:$0]  (!%p2046_p11), %s2462_s4, 2048, %s2050_s30, [#allocation9], %s1920_s17, %s1920_s17, %s1921_s9  }
  0x55   : > { %s1922_s15 = smov [#allocation10]   ;;  %s1923_s26 = smov [#allocation11]  }
  0x56   : > { %s357_s16 = sshll.u32 %s1922_s15, 4  ;;  %s373_s29 = sshll.u32 %s1923_s26, 4  ;;  %s358_s16 = int_to_ptr.vmem [resolvable:$true] %s357_s16  ;;  %s2107_s29 = int_to_ptr.vmem [resolvable:$true] %s373_s29 }
  0x57   : > { %s2463_s6 = sld [smem:[#allocation28_spill]] }
  0x5d   : > { %s1684_s13 = scalar_lea.hbm %s2463_s6, 1024 }
  0x5e   : > { %p1685_p6 = scmp.ne.s32.totalorder %s2463_s6, %s1684_s13  ;;  %p1691_p5 = scmp.lt.u32.totalorder %s1684_s13, %s2463_s6 }
  0x60   : > { %p1687_p10 = pnand %p1685_p6, %p2060_p13 }
  0x62   : > { %p1688_p3 = pneg %p1687_p10 }
  0x64   : > { %p1693_p7 = pnand %p1691_p5, %p1688_p3 }
  0x66   : > { %1696 = shalt.err (!%p1693_p7)
}
  0x67   : > { %s1697_s17 = scalar_lea.vmem %s358_s16, 1024  ;;  %p1705_p1 = scmp.lt.s32.totalorder %s358_s16, %s358_s16 }
  0x68   : > { %p1698_p9 = scmp.ne.s32.totalorder %s358_s16, %s1697_s17  ;;  %p1706_p2 = scmp.lt.s32.totalorder %s1697_s17, %s1697_s17 }
  0x6a   : > { %p1700_p12 = pnand %p1698_p9, %p2060_p13  ;;  %p1707_p4 = por %p1706_p2, %p1705_p1 }
  0x6c   : > { %p1701_p0 = pneg %p1700_p12 }
  0x6e   : > { %p1708_p8 = pnand %p1707_p4, %p1701_p0 }
  0x70   : > { %1711 = shalt.err (!%p1708_p8)
}
  0x71   : > { %s2464_s2 = smov 4   ;;  %s2465_s14 = smov 64  }
  0x72   : > { %1492 = dma.hbm_to_vmem [thread:$0]  (!%p2046_p11), %s2463_s6, 1024, %s358_s16, [#allocation9], %s2465_s14, %s2465_s14, %s2464_s2  }
  0x73   : > { %s2466_s8 = sld [smem:[#allocation29_spill]] }
  0x79   : > { %s1712_s26 = scalar_lea.hbm %s2466_s8, 1024 }
  0x7a   : > { %p1713_p6 = scmp.ne.s32.totalorder %s2466_s8, %s1712_s26  ;;  %p1719_p10 = scmp.lt.u32.totalorder %s1712_s26, %s2466_s8 }
  0x7c   : > { %p1715_p4 = pnand %p1713_p6, %p2060_p13 }
  0x7e   : > { %p1716_p8 = pneg %p1715_p4 }
  0x80   : > { %p1721_p3 = pnand %p1719_p10, %p1716_p8 }
  0x82   : > { %1724 = shalt.err (!%p1721_p3)
}
  0x83   : > { %s1725_s16 = scalar_lea.vmem %s2107_s29, 1024  ;;  %p1733_p12 = scmp.lt.s32.totalorder %s2107_s29, %s2107_s29 }
  0x84   : > { %p1726_p5 = scmp.ne.s32.totalorder %s2107_s29, %s1725_s16  ;;  %p1734_p0 = scmp.lt.s32.totalorder %s1725_s16, %s1725_s16 }
  0x86   : > { %p1728_p7 = pnand %p1726_p5, %p2060_p13  ;;  %p1735_p1 = por %p1734_p0, %p1733_p12 }
  0x88   : > { %p1729_p9 = pneg %p1728_p7 }
  0x8a   : > { %p1736_p2 = pnand %p1735_p1, %p1729_p9 }
  0x8c   : > { %1739 = shalt.err (!%p1736_p2)
}
  0x8d   : > { %1495 = dma.hbm_to_vmem [thread:$0]  (!%p2046_p11), %s2466_s8, 1024, %s2107_s29, [#allocation12], %s2465_s14, %s2465_s14, %s2464_s2  }
  0x8e   : > { %s2157_s28 = sadd.s32 1, %s1914_s20   ;;  %s43_s13 = sadd.s32 1, %s1910_s19 }
  0x8f   : > { %s40_s22 = ssub.s32 %s1914_s20, %s2157_s28  ;;  %p50_p6 = scmp.ne.s32.totalorder %s1910_s19, %s1906_s18 }
  0x90   : > { %p41_p13 = scmp.eq.s32.totalorder %s40_s22, 0  ;;  %p51_p4 = scmp.eq.s32.totalorder %s1914_s20, 0 }
  0x91   : > { %p2468_p10 = scmp.eq.s32.totalorder %s2016_s21, 1  ;;  %p1514_p5 = scmp.lt.s32.totalorder %s1914_s20, 2 }
  0x92   : > { %s2166_s24 = scalar_select %p41_p13, %s1910_s19, %s43_s13  }
  0x93   : > { %p52_p8 = por %p51_p4, %p50_p6  ;;  %p2170_p3 = por %p2468_p10, %p50_p6 }
  0x94   : > { %2467 = sst [smem:[#allocation25_spill]] %s2166_s24  ;;  %s390_s26 = sand.u32 1, %s1910_s19  }
  0x95   : > { %s1282_s12 = sshll.u32 %s390_s26, 3  ;;  %s1354_s29 = sshll.u32 %s1914_s20, 7 }
  0x96   : > { %s2180_s30 = scalar_lea.hbm %s2426_s0, %s1354_s29  ;;  %s394_s16 = scalar_lea.vmem [#allocation2], %s1282_s12 }
  0x97   : > { %s401_s17 = sshll.u32 %s394_s16, 4  ;;  %p2184_p11 = pnand %p1514_p5, %p52_p8  ;;  %s2182_s17 = int_to_ptr.vmem [resolvable:$true] %s401_s17 }
  0x98   : > { %s2191_s27 = scalar_lea.hbm %s2427_s1, %s1354_s29  ;;  %s415_s10 = scalar_lea.vmem [#allocation5], %s1282_s12 }
  0x99   : > { %s2193_s4 = sshll.u32 %s415_s10, 4  ;;  %s2195_s6 = scalar_lea.sflag [#allocation3], %s390_s26  ;;  %s2227_s4 = int_to_ptr.vmem [resolvable:$true] %s2193_s4 }
  0x9a   : > { %s1740_s16 = scalar_lea.hbm %s2180_s30, 128  ;;  %p1742_p9 = pneg %p2184_p11 }
  0x9b   : > { %p1741_p7 = scmp.ne.s32.totalorder %s2180_s30, %s1740_s16  ;;  %s1745_s22 = scalar_lea.hbm %s2426_s0, 256 }
  0x9c   : > { %p1746_p1 = scmp.lt.u32.totalorder %s2180_s30, %s2426_s0  ;;  %p1747_p2 = scmp.lt.u32.totalorder %s1745_s22, %s1740_s16 }
  0x9d   : > { %p1743_p12 = pnand %p1742_p9, %p1741_p7  ;;  %p1749_p6 = scmp.lt.u32.totalorder %s1740_s16, %s2180_s30 }
  0x9e   : > { %p1748_p13 = por %p1747_p2, %p1746_p1 }
  0x9f   : > { %p1744_p0 = pneg %p1743_p12 }
  0xa0   : > { %p1750_p4 = por %p1749_p6, %p1748_p13 }
  0xa2   : > { %p1751_p8 = pnand %p1750_p4, %p1744_p0 }
  0xa4   : > { %1754 = shalt.err (!%p1751_p8)
}
  0xa5   : > { %s1755_s26 = scalar_lea.vmem %s2182_s17, 128  ;;  %s1924_s8 = smov [#allocation2]  }
  0xa6   : > { %p1756_p10 = scmp.ne.s32.totalorder %s2182_s17, %s1755_s26  ;;  %s1760_s24 = sshll.u32 %s1924_s8, 4  ;;  %s1761_s24 = int_to_ptr.vmem [resolvable:$false] %s1760_s24 }
  0xa7   : > { %s1762_s12 = scalar_lea.vmem %s1761_s24, 256  ;;  %p1763_p12 = scmp.lt.s32.totalorder %s2182_s17, %s1761_s24 }
  0xa8   : > { %p1758_p5 = pnand %p1756_p10, %p1742_p9  ;;  %p1764_p1 = scmp.lt.s32.totalorder %s1762_s12, %s1755_s26 }
  0xaa   : > { %p1759_p7 = pneg %p1758_p5  ;;  %p1765_p2 = por %p1764_p1, %p1763_p12 }
  0xac   : > { %p1766_p13 = pnand %p1765_p2, %p1759_p7 }
  0xae   : > { %1769 = shalt.err (!%p1766_p13)
}
  0xaf   : > { %1499 = dma.hbm_to_vmem [thread:$0]  (!%p2184_p11), %s2180_s30, 128, %s2182_s17, %s2195_s6, %s2465_s14, %s2465_s14, %s2464_s2  }
  0xb0   : > { %s411_s10 = sand.u32 1, %s1914_s20   ;;  %s1770_s22 = scalar_lea.hbm %s2191_s27, 128 }
  0xb1   : > { %s2230_s16 = scalar_lea.sflag [#allocation6], %s411_s10  ;;  %p1771_p0 = scmp.ne.s32.totalorder %s2191_s27, %s1770_s22 }
  0xb2   : > { %s1775_s26 = scalar_lea.hbm %s2427_s1, 256  ;;  %p1776_p8 = scmp.lt.u32.totalorder %s2191_s27, %s2427_s1 }
  0xb3   : > { %p1773_p6 = pnand %p1771_p0, %p1742_p9  ;;  %p1777_p10 = scmp.lt.u32.totalorder %s1775_s26, %s1770_s22 }
  0xb4   : > { %p1779_p7 = scmp.lt.u32.totalorder %s1770_s22, %s2191_s27 }
  0xb5   : > { %p1774_p4 = pneg %p1773_p6  ;;  %p1778_p5 = por %p1777_p10, %p1776_p8 }
  0xb7   : > { %p1780_p12 = por %p1779_p7, %p1778_p5 }
  0xb9   : > { %p1781_p1 = pnand %p1780_p12, %p1774_p4 }
  0xbb   : > { %1784 = shalt.err (!%p1781_p1)
}
  0xbc   : > { %s1785_s6 = scalar_lea.vmem %s2227_s4, 128  ;;  %s1925_s30 = smov [#allocation5]  }
  0xbd   : > { %p1786_p2 = scmp.ne.s32.totalorder %s2227_s4, %s1785_s6  ;;  %s1790_s17 = sshll.u32 %s1925_s30, 4  ;;  %s1791_s17 = int_to_ptr.vmem [resolvable:$false] %s1790_s17 }
  0xbe   : > { %s1792_s12 = scalar_lea.vmem %s1791_s17, 256  ;;  %p1793_p6 = scmp.lt.s32.totalorder %s2227_s4, %s1791_s17 }
  0xbf   : > { %p1788_p13 = pnand %p1786_p2, %p1742_p9  ;;  %p1794_p8 = scmp.lt.s32.totalorder %s1792_s12, %s1785_s6 }
  0xc1   : > { %p1789_p0 = pneg %p1788_p13  ;;  %p1795_p10 = por %p1794_p8, %p1793_p6 }
  0xc3   : > { %p1796_p5 = pnand %p1795_p10, %p1789_p0 }
  0xc5   : > { %1799 = shalt.err (!%p1796_p5)
}
  0xc6   : > { %1502 = dma.hbm_to_vmem [thread:$0]  (!%p2184_p11), %s2191_s27, 128, %s2227_s4, %s2230_s16, %s2465_s14, %s2465_s14, %s2464_s2  }
  0xc7   : > { %p2471_p9 = scmp.ne.s32.totalorder %s2458_s25, 0 }
  0xc8   : > { %s2262_s10 = sand.u32 (!%p2471_p9), 1, %s1906_s18   ;;  %p2472_p4 = scmp.ne.s32.totalorder (!%p2471_p9), %s2455_s23, 0 }
  0xc9   : > { %434 = sbr.rel (%p2471_p9) target bundleno = 1198 (0x4ae), region = 60  ;;  %s2265_s22 = sshll.u32 (!%p2471_p9), %s2262_s10, 3 }
  0xca   : > { %s437_s9 = scalar_lea.sflag (!%p2471_p9), [#allocation3], %s2262_s10  ;;  %s440_s13 = scalar_lea.vmem (!%p2471_p9), [#allocation2], %s2265_s22 }
  0xd0   : > { %1873 = dma.done.wait (%p2472_p4), %s437_s9, 128  }
  0xd1   : > { %1875 = vsyncadd (%p2472_p4), %s437_s9, 4294967168  ;;  %s445_s4 = sand.u32 1, %s2016_s21   ;;  %s449_s2 = scalar_lea.vmem [#allocation5], %s2265_s22 }
  0xd2   : > { %s446_s25 = scalar_lea.sflag [#allocation6], %s445_s4 }
  0xd3   : > { %1877 = dma.done.wait (%p2472_p4), %s446_s25, 128  }
  0xd4   : > { %1879 = vsyncadd (%p2472_p4), %s446_s25, 4294967168  ;;  %p2473_p11 = scmp.eq.s32.totalorder %s2016_s21, 0 }
  0xd6   : > { %1881 = dma.done.wait (%p2473_p11), [#allocation6], 1024   ;;  %p2474_p7 = pmov %p2473_p11 }
  0xd8   : > { %1883 = vsyncadd (%p2474_p7), [#allocation6], 4294966272  ;;  %p2475_p12 = pmov %p2474_p7 }
  0xd9   : > { %p2476_p1 = pmov %p2474_p7 }
  0xda   : > { %1885 = dma.done.wait (%p2475_p12), [#allocation9], 3072  }
  0xdb   : > { %1887 = vsyncadd (%p2476_p1), [#allocation9], 4294964224  ;;  %p2477_p2 = pmov %p2476_p1 }
  0xdc   : > { %p2478_p13 = pmov %p2476_p1 }
  0xdd   : > { %1889 = dma.done.wait (%p2477_p2), [#allocation12], 1024  }
  0xde   : > { %1891 = vsyncadd (%p2478_p13), [#allocation12], 4294966272  ;;  %v1926_v0 = vmov 0.0   ;;  %vm1927_vm0 = vmmov 0   ;;  %v1567_v1 = vld [vmem:[#allocation7] sm:$0xff]   ;;  %v1568_v2 = vld [vmem:[#allocation7 + $0x8] sm:$0xff]   ;;  %v660_v51 = vlaneseq }
  0xdf   : > { %1399 = vmatprep.subr.bf16.mxu0 %v1926_v0  ;;  %1415 = vmatprep.mubr.msk.bf16.mxu0 %vm1927_vm0, %v1926_v0  ;;  %v1569_v3 = vld [vmem:[#allocation7 + $0x10] sm:$0xff]   ;;  %v1570_v4 = vld [vmem:[#allocation7 + $0x18] sm:$0xff]   ;;  %v1576_v5 = vld [vmem:[#allocation8 + $0x4] ss:$8 sps:$4 sm:$0xff]   ;;  %v1928_v26 = vmov 0   ;;  %s1296_s29 = sshll.u32 %s2262_s10, 4 }
  0xe0   : > { %1400 = vmatpush3.bf16.msra.mxu0 %v1567_v1  ;;  %v1578_v6 = vld [vmem:[#allocation8] ss:$8 sps:$4 sm:$0xff]   ;;  %750 = vmatprep.subr.bf16.mxu1 %v1576_v5  ;;  %v1579_v7 = vld [vmem:[#allocation8 + $0x14] ss:$8 sps:$4 sm:$0xff]   ;;  %v1581_v8 = vld [vmem:[#allocation8 + $0x10] ss:$8 sps:$4 sm:$0xff]  }
  0xe1   : > { %1401 = vmatprep.subr.bf16.mxu0 %v1926_v0  ;;  %751 = vmatpush1.bf16.msra.mxu1 %v1578_v6  ;;  %v1582_v9 = vld [vmem:[#allocation8 + $0x24] ss:$8 sps:$4 sm:$0xff]   ;;  %v1584_v12 = vld [vmem:[#allocation8 + $0x20] ss:$8 sps:$4 sm:$0xff]   ;;  %v1585_v13 = vld [vmem:[#allocation8 + $0x34] ss:$8 sps:$4 sm:$0xff]  }
  0xe2   : > { %752 = vmatprep.subr.bf16.mxu1 %v1579_v7  ;;  %v1571_v10 = vld [vmem:[#allocation7 + $0x20] sm:$0xff]   ;;  %v1572_v11 = vld [vmem:[#allocation7 + $0x28] sm:$0xff]   ;;  %v1587_v14 = vld [vmem:[#allocation8 + $0x30] ss:$8 sps:$4 sm:$0xff]   ;;  %782 = vmatprep.mubr.bf16.mxu1 %v1928_v26  ;;  %v661_v52 = vshrl.u32 %v660_v51, 7  ;;  %s2329_s26 = scalar_lea.vmem [#allocation14], %s1296_s29 }
  0xe3   : > { %v1588_v15 = vld [vmem:[#allocation8 + $0x44] ss:$8 sps:$4 sm:$0xff]   ;;  %v1573_v16 = vld [vmem:[#allocation7 + $0x30] sm:$0xff]   ;;  %v1590_v17 = vld [vmem:[#allocation8 + $0x40] ss:$8 sps:$4 sm:$0xff]   ;;  %s1109_s6 = sshll.u32 %s2329_s26, 4  ;;  %s2340_s6 = int_to_ptr.vmem [resolvable:$true] %s1109_s6 }
  0xe4   : > { %1402 = vmatpush3.bf16.msra.mxu0 %v1568_v2  ;;  %v1591_v18 = vld [vmem:[#allocation8 + $0x54] ss:$8 sps:$4 sm:$0xff]   ;;  %v1593_v20 = vld [vmem:[#allocation8 + $0x50] ss:$8 sps:$4 sm:$0xff]   ;;  %v1575_v21 = vld [vmem:[%s440_s13] sm:$0xff]   ;;  %v662_v53 = vsub.s32 0, %v661_v52 }
  0xe5   : > { %1403 = vmatprep.subr.bf16.mxu0 %v1926_v0  ;;  %753 = vmatpush1.bf16.msra.mxu1 %v1581_v8  ;;  %v1574_v19 = vld [vmem:[#allocation7 + $0x38] sm:$0xff]   ;;  %v1594_v22 = vld [vmem:[#allocation8 + $0x64] ss:$8 sps:$4 sm:$0xff]   ;;  %v1596_v23 = vld [vmem:[#allocation8 + $0x60] ss:$8 sps:$4 sm:$0xff]   ;;  %v666_v55 = vsub.s32 1, %v661_v52 }
  0xe6   : > { %754 = vmatprep.subr.bf16.mxu1 %v1582_v9  ;;  %v1597_v24 = vld [vmem:[#allocation8 + $0x74] ss:$8 sps:$4 sm:$0xff]   ;;  %v1599_v25 = vld [vmem:[#allocation8 + $0x70] ss:$8 sps:$4 sm:$0xff]   ;;  %v1600_v27 = vld [vmem:[#allocation10] sm:$0xff]   ;;  %s1362_s30 = sshll.u32 %s2016_s21, 8 }
  0xe7   : > { %v1297_v28 = vld [vmem:[%s2429_s3] ss:$0 sm:$0xff]  ;;  %v1601_v38 = vld [vmem:[#allocation10 + $0x8] sm:$0xff]   ;;  %v1602_v39 = vld [vmem:[#allocation10 + $0x10] sm:$0xff]   ;;  %s2346_s9 = scalar_lea.hbm %s2437_s11, %s1362_s30  ;;  %s1079_s13 = scalar_lea.sflag [#allocation15], %s2262_s10 }
  0xe8   : > { %1404 = vmatpush3.bf16.msra.mxu0 %v1569_v3  ;;  %v1603_v40 = vld [vmem:[#allocation10 + $0x18] sm:$0xff]   ;;  %v1604_v41 = vld [vmem:[#allocation10 + $0x20] sm:$0xff]   ;;  %v1605_v42 = vld [vmem:[#allocation10 + $0x28] sm:$0xff]   ;;  %s1800_s4 = scalar_lea.vmem %s2340_s6, 256  ;;  %s1929_s25 = smov [#allocation14]  }
  0xe9   : > { %1405 = vmatprep.subr.bf16.mxu0 %v1926_v0  ;;  %755 = vmatpush1.bf16.msra.mxu1 %v1584_v12  ;;  %v1606_v43 = vld [vmem:[#allocation10 + $0x30] sm:$0xff]   ;;  %v1607_v44 = vld [vmem:[#allocation10 + $0x38] sm:$0xff]   ;;  %v1608_v45 = vld [vmem:[#allocation11] sm:$0xff]   ;;  %p1801_p0 = scmp.ne.s32.totalorder %s2340_s6, %s1800_s4 }
  0xea   : > { %756 = vmatprep.subr.bf16.mxu1 %v1585_v13  ;;  %v1609_v46 = vld [vmem:[#allocation11 + $0x8] sm:$0xff]   ;;  %v1610_v47 = vld [vmem:[#allocation11 + $0x10] sm:$0xff]   ;;  %v1611_v48 = vld [vmem:[#allocation11 + $0x18] sm:$0xff]  }
  0xeb   : > { %v1612_v49 = vld [vmem:[#allocation11 + $0x20] sm:$0xff]   ;;  %v1613_v50 = vld [vmem:[#allocation11 + $0x28] sm:$0xff]   ;;  %v1364_v9 = vld [vmem:[%s449_s2] sm:$0xff]   ;;  %p1802_p6 = pnand %p1801_p0, %p2170_p3  ;;  %s1804_s2 = sshll.u32 %s1929_s25, 4  ;;  %s1805_s2 = int_to_ptr.vmem [resolvable:$false] %s1804_s2 }
  0xec   : > { %1406 = vmatpush3.bf16.msra.mxu0 %v1570_v4  ;;  %v658_v54 = vld [vmem:[%s2431_s5] sm:$0x3]  ;;  %s1806_s23 = scalar_lea.vmem %s1805_s2, 512  ;;  %p1807_p10 = scmp.lt.s32.totalorder %s2340_s6, %s1805_s2 }
  0xed   : > { %1407 = vmatprep.subr.bf16.mxu0 %v1926_v0  ;;  %757 = vmatpush1.bf16.msra.mxu1 %v1587_v14  ;;  %v663_v56 = vrot.slane %v658_v54, %v662_v53  ;;  %v667_v57 = vrot.slane %v658_v54, %v666_v55  ;;  %p1803_p8 = pneg %p1802_p6  ;;  %p1808_p5 = scmp.lt.s32.totalorder %s1806_s23, %s1800_s4 }
  0xee   : > { %758 = vmatprep.subr.bf16.mxu1 %v1588_v15 }
  0xef   : > { %p1809_p9 = por %p1808_p5, %p1807_p10 }
  0xf0   : > { %1408 = vmatpush3.bf16.msra.mxu0 %v1571_v10  ;;  %v1365_v10 = vunpack.c.l.bf16 %v1364_v9 }
  0xf1   : > { %1409 = vmatprep.subr.bf16.mxu0 %v1926_v0  ;;  %759 = vmatpush1.bf16.msra.mxu1 %v1590_v17  ;;  %p1810_p4 = pnand %p1809_p9, %p1803_p8 }
  0xf2   : > { %760 = vmatprep.subr.bf16.mxu1 %v1591_v18 }
  0xf4   : > { %1410 = vmatpush3.bf16.msra.mxu0 %v1572_v11  ;;  %v1366_v11 = vunpack.c.h.bf16 %v1364_v9 }
  0xf5   : > { %1411 = vmatprep.subr.bf16.mxu0 %v1926_v0  ;;  %761 = vmatpush1.bf16.msra.mxu1 %v1593_v20  ;;  %v1615_v20 = vld [vmem:[#allocation11 + $0x38] sm:$0xff]  }
  0xf6   : > { %762 = vmatprep.subr.bf16.mxu1 %v1594_v22 }
  0xf8   : > { %1412 = vmatpush3.bf16.msra.mxu0 %v1573_v16 }
  0xf9   : > { %1413 = vmatprep.subr.bf16.mxu0 %v1926_v0  ;;  %763 = vmatpush1.bf16.msra.mxu1 %v1596_v23 }
  0xfa   : > { %764 = vmatprep.subr.bf16.mxu1 %v1597_v24 }
  0xfc   : > { %1414 = vmatpush3.bf16.msra.mxu0 %v1574_v19  ;;  %v1614_v19 = vld [vmem:[#allocation11 + $0x30] sm:$0xff]  }
  0xfd   : > { %1419 = vmatprep.subr.bf16.mxu0 %v1926_v0  ;;  %765 = vmatpush1.bf16.msra.mxu1 %v1599_v25 }
  0xfe   : > { %1439 = vmatprep.subr.bf16.mxu1 %v1926_v0 }
  0xff   : > { %1416 = vmatmul.mubr.bf16.vlgmr.msra.gmra.mrb[0].mxu0 %v1575_v21  ;;  %v1323_v21 = vld [vmem:[%s2433_s7] ss:$0 sm:$0xff] }
 0x100   : > { %1435 = vmatprep.mubr.msk.bf16.mxu0 %vm1927_vm0, %v1926_v0  ;;  %1420 = vmatpush3.bf16.msra.mxu0 %v1600_v27 }
 0x101   : > { %1421 = vmatprep.subr.bf16.mxu0 %v1926_v0 }
 0x104   : > { %1422 = vmatpush3.bf16.msra.mxu0 %v1601_v38 }
 0x105   : > { %1423 = vmatprep.subr.bf16.mxu0 %v1926_v0 }
 0x108   : > { %1424 = vmatpush3.bf16.msra.mxu0 %v1602_v39 }
 0x109   : > { %1425 = vmatprep.subr.bf16.mxu0 %v1926_v0 }
 0x10c   : > { %1426 = vmatpush3.bf16.msra.mxu0 %v1603_v40 }
 0x10d   : > { %1427 = vmatprep.subr.bf16.mxu0 %v1926_v0 }
 0x110   : > { %1428 = vmatpush3.bf16.msra.mxu0 %v1604_v41 }
 0x111   : > { %1429 = vmatprep.subr.bf16.mxu0 %v1926_v0 }
 0x114   : > { %1430 = vmatpush3.bf16.msra.mxu0 %v1605_v42 }
 0x115   : > { %1431 = vmatprep.subr.bf16.mxu0 %v1926_v0 }
 0x118   : > { %1432 = vmatpush3.bf16.msra.mxu0 %v1606_v43 }
 0x119   : > { %1433 = vmatprep.subr.bf16.mxu0 %v1926_v0 }
 0x11c   : > { %1434 = vmatpush3.bf16.msra.mxu0 %v1607_v44 }
 0x1d2   : > { %v632_v29 = vpop.f32.mrb[0].mxu0 }
 0x1d3   : > { %v633_v30 = vadd.f32 %v1297_v28, %v632_v29  ;;  %v1417_v31 = vpop.f32.mrb[1].mxu0 }
 0x1d4   : > { %v635_v32 = vpop.f32.mrb[2].mxu0 }
 0x1d5   : > { %v636_v33 = vadd.f32 %v1297_v28, %v635_v32  ;;  %v1418_v34 = vpop.f32.mrb[3].mxu0  ;;  %v639_v35 = vmax.f32 %v633_v30, 0.0 }
 0x1d7   : > { %v640_v36 = vmax.f32 %v636_v33, 0.0 }
 0x1d9   : > { %v641_v37 = vpack.c.bf16 %v640_v36, %v639_v35 }
 0x1db   : > { %783 = vmatmul.mubr.bf16.vlgmr.msra.gmra.mrb[0].mxu1 %v641_v37 }
 0x1dc   : > { %1455 = vmatprep.mubr.msk.bf16.mxu1 %vm1927_vm0, %v1926_v0  ;;  %1440 = vmatpush3.bf16.msra.mxu1 %v1608_v45 }
 0x1dd   : > { %1441 = vmatprep.subr.bf16.mxu1 %v1926_v0 }
 0x1e0   : > { %1442 = vmatpush3.bf16.msra.mxu1 %v1609_v46 }
 0x1e1   : > { %1443 = vmatprep.subr.bf16.mxu1 %v1926_v0 }
 0x1e4   : > { %1444 = vmatpush3.bf16.msra.mxu1 %v1610_v47 }
 0x1e5   : > { %1445 = vmatprep.subr.bf16.mxu1 %v1926_v0 }
 0x1e8   : > { %1446 = vmatpush3.bf16.msra.mxu1 %v1611_v48 }
 0x1e9   : > { %1447 = vmatprep.subr.bf16.mxu1 %v1926_v0 }
 0x1ec   : > { %1448 = vmatpush3.bf16.msra.mxu1 %v1612_v49 }
 0x1ed   : > { %1449 = vmatprep.subr.bf16.mxu1 %v1926_v0 }
 0x1f0   : > { %1450 = vmatpush3.bf16.msra.mxu1 %v1613_v50 }
 0x1f1   : > { %1451 = vmatprep.subr.bf16.mxu1 %v1926_v0 }
 0x1f4   : > { %1452 = vmatpush3.bf16.msra.mxu1 %v1614_v19 }
 0x1f5   : > { %1453 = vmatprep.subr.bf16.mxu1 %v1926_v0 }
 0x1f8   : > { %1454 = vmatpush3.bf16.msra.mxu1 %v1615_v20 }
 0x2ae   : > { %v784_v58 = vpop.f32.mrb[0].mxu1 }
 0x2af   : > { %v785_v59 = vadd.f32 %v784_v58, %v663_v56  ;;  %v786_v60 = vpop.f32.mrb[1].mxu1 }
 0x2b0   : > { %v787_v61 = vadd.f32 %v786_v60, %v667_v57  ;;  %v788_v62 = vpop.f32.mrb[2].mxu1 }
 0x2b1   : > { %v789_v63 = vadd.f32 %v788_v62, %v663_v56  ;;  %v790_v1 = vpop.f32.mrb[3].mxu1 }
 0x2b2   : > { %v793_v2 = vmul.f32 0.5, %v787_v61  ;;  %v1358_v3 = vpack.c.bf16 %v787_v61, %v785_v59  ;;  %v791_v4 = vadd.f32 %v790_v1, %v667_v57 }
 0x2b4   : > { %v795_v5 = vmul.f32 1.442695, %v793_v2  ;;  %1071 = vst [vmem:[%s2329_s26] sm:$0xff] %v1358_v3  ;;  %v794_v6 = vmul.f32 0.5, %v791_v4  ;;  %v1359_v7 = vpack.c.bf16 %v791_v4, %v789_v63 }
 0x2b6   : > { %1616 = vpow2.f32 %v795_v5  ;;  %v797_v8 = vmul.f32 1.442695, %v794_v6  ;;  %1072 = vst [vmem:[%s2329_s26 + $0x8] sm:$0xff] %v1359_v7 }
 0x2b8   : > { %1618 = vpow2.f32 %v797_v8 }
 0x2c0   : > { %v1617_v12 = vpop.eup %1616 }
 0x2c1   : > { %v803_v13 = vmul.f32 %v1617_v12, %v1365_v10 }
 0x2c2   : > { %v1619_v14 = vpop.eup %1618 }
 0x2c3   : > { %v804_v15 = vmul.f32 %v1619_v14, %v1366_v11  ;;  %v805_v16 = vadd.f32 %v803_v13, %v785_v59 }
 0x2c5   : > { %v806_v17 = vadd.f32 %v804_v15, %v789_v63 }
 0x2c7   : > { %v807_v18 = vpack.c.bf16 %v806_v17, %v805_v16 }
 0x2c9   : > { %1436 = vmatmul.mubr.bf16.vlgmr.msra.gmra.mrb[4].mxu0 %v807_v18 }
 0x39c   : > { %v913_v22 = vpop.f32.mrb[4].mxu0 }
 0x39d   : > { %v914_v23 = vadd.f32 %v1323_v21, %v913_v22  ;;  %v1437_v24 = vpop.f32.mrb[5].mxu0 }
 0x39e   : > { %v916_v25 = vpop.f32.mrb[6].mxu0 }
 0x39f   : > { %v917_v26 = vadd.f32 %v1323_v21, %v916_v25  ;;  %v1438_v27 = vpop.f32.mrb[7].mxu0  ;;  %v920_v28 = vmax.f32 %v914_v23, 0.0 }
 0x3a1   : > { %v921_v29 = vmax.f32 %v917_v26, 0.0 }
 0x3a3   : > { %v922_v30 = vpack.c.bf16 %v921_v29, %v920_v28 }
 0x3a5   : > { %1456 = vmatmul.mubr.bf16.vlgmr.msra.gmra.mrb[4].mxu1 %v922_v30 }
 0x3a6   : > { %1813 = shalt.err (!%p1810_p4)
}
 0x3a7   : > { %s1814_s14 = scalar_lea.hbm %s2346_s9, 256  ;;  %s1818_s29 = scalar_lea.hbm %s2437_s11, 512 }
 0x3a8   : > { %p1815_p11 = scmp.ne.s32.totalorder %s2346_s9, %s1814_s14  ;;  %p1819_p1 = scmp.lt.u32.totalorder %s2346_s9, %s2437_s11 }
 0x3a9   : > { %p1820_p2 = scmp.lt.u32.totalorder %s1818_s29, %s1814_s14  ;;  %p1822_p0 = scmp.lt.u32.totalorder %s1814_s14, %s2346_s9 }
 0x3aa   : > { %p1816_p7 = pnand %p1815_p11, %p2170_p3 }
 0x3ab   : > { %p1821_p13 = por %p1820_p2, %p1819_p1 }
 0x3ac   : > { %p1817_p12 = pneg %p1816_p7 }
 0x3ad   : > { %p1823_p6 = por %p1822_p0, %p1821_p13 }
 0x3af   : > { %p1824_p8 = pnand %p1823_p6, %p1817_p12 }
 0x3b1   : > { %1827 = shalt.err (!%p1824_p8)
}
 0x3b2   : > { %s1930_s24 = smov 128   ;;  %s1931_s30 = smov 8  }
 0x3b3   : > { %1480 = dma.vmem_to_hbm [thread:$0]  (%p2170_p3), %s2340_s6, 256, %s2346_s9, %s1079_s13, %s1930_s24, %s1930_s24, %s1931_s30  }
 0x3b4   : > { %s2479_s4 = sld [smem:[#allocation30_spill]]  ;;  %s1360_s6 = sshll.u32 %s2016_s21, 7 }
 0x3b5   : > { %s506_s9 = scalar_lea.vmem [#allocation13], %s2265_s22  ;;  %s2480_s23 = sld [smem:[#allocation31_spill]] }
 0x3b6   : > { %s1092_s13 = sshll.u32 %s506_s9, 4  ;;  %s1074_s27 = scalar_lea.sflag [#allocation4], %s2262_s10  ;;  %s2382_s13 = int_to_ptr.vmem [resolvable:$true] %s1092_s13 }
 0x3b7   : > { %s1828_s16 = scalar_lea.vmem %s2382_s13, 128  ;;  %s1932_s21 = smov [#allocation13]  }
 0x3b8   : > { %p1829_p10 = scmp.ne.s32.totalorder %s2382_s13, %s1828_s16  ;;  %s1832_s22 = sshll.u32 %s1932_s21, 4  ;;  %s1833_s22 = int_to_ptr.vmem [resolvable:$false] %s1832_s22 }
 0x3b9   : > { %s1834_s29 = scalar_lea.vmem %s1833_s22, 256  ;;  %p1835_p4 = scmp.lt.s32.totalorder %s2382_s13, %s1833_s22 }
 0x3ba   : > { %v1332_v0 = vld [vmem:[%s2479_s4] ss:$0 sm:$0xff]  ;;  %p1830_p5 = pnand %p1829_p10, %p2170_p3  ;;  %p1836_p11 = scmp.lt.s32.totalorder %s1834_s29, %s1828_s16 }
 0x3bb   : > { %s2380_s14 = scalar_lea.hbm %s2480_s23, %s1360_s6 }
 0x3bc   : > { %p1831_p9 = pneg %p1830_p5  ;;  %p1837_p7 = por %p1836_p11, %p1835_p4 }
 0x3be   : > { %p1838_p12 = pnand %p1837_p7, %p1831_p9 }
 0x478   : > { %v1028_v31 = vpop.f32.mrb[4].mxu1 }
 0x479   : > { %v1029_v32 = vadd.f32 %v1332_v0, %v1028_v31  ;;  %v1457_v33 = vpop.f32.mrb[5].mxu1 }
 0x47a   : > { %v1031_v34 = vpop.f32.mrb[6].mxu1 }
 0x47b   : > { %v1035_v35 = vsub.f32 0.0, %v1029_v32  ;;  %v1032_v36 = vadd.f32 %v1332_v0, %v1031_v34  ;;  %v1458_v37 = vpop.f32.mrb[7].mxu1 }
 0x47d   : > { %v1037_v38 = vmul.f32 1.442695, %v1035_v35  ;;  %v1036_v39 = vsub.f32 0.0, %v1032_v36 }
 0x47f   : > { %1620 = vpow2.f32 %v1037_v38  ;;  %v1039_v40 = vmul.f32 1.442695, %v1036_v39 }
 0x481   : > { %1622 = vpow2.f32 %v1039_v40 }
 0x489   : > { %v1621_v41 = vpop.eup %1620 }
 0x48a   : > { %v1041_v42 = vadd.f32 1.0, %v1621_v41 }
 0x48b   : > { %v1623_v43 = vpop.eup %1622 }
 0x48c   : > { %1624 = vrcp.f32 %v1041_v42  ;;  %v1042_v44 = vadd.f32 1.0, %v1623_v43 }
 0x48e   : > { %1626 = vrcp.f32 %v1042_v44 }
 0x496   : > { %v1625_v45 = vpop.eup %1624 }
 0x497   : > { %v1045_v46 = vmax.f32 %v1625_v45, 0.0 }
 0x498   : > { %v1627_v47 = vpop.eup %1626 }
 0x499   : > { %v1046_v48 = vmax.f32 %v1627_v47, 0.0  ;;  %v1047_v49 = vmin.f32 %v1045_v46, 1.0 }
 0x49b   : > { %v1048_v50 = vmin.f32 %v1046_v48, 1.0 }
 0x49d   : > { %v1370_v51 = vpack.c.bf16 %v1048_v50, %v1047_v49 }
 0x49f   : > { %1371 = vst [vmem:[%s506_s9] sm:$0xff] %v1370_v51  }
 0x4a0   : > { %1841 = shalt.err (!%p1838_p12)
}
 0x4a1   : > { %s1842_s26 = scalar_lea.hbm %s2380_s14, 128  ;;  %s1846_s30 = scalar_lea.hbm %s2480_s23, 256 }
 0x4a2   : > { %p1843_p1 = scmp.ne.s32.totalorder %s2380_s14, %s1842_s26  ;;  %p1847_p0 = scmp.lt.u32.totalorder %s2380_s14, %s2480_s23 }
 0x4a3   : > { %p1848_p6 = scmp.lt.u32.totalorder %s1846_s30, %s1842_s26  ;;  %p1850_p10 = scmp.lt.u32.totalorder %s1842_s26, %s2380_s14 }
 0x4a4   : > { %p1844_p2 = pnand %p1843_p1, %p2170_p3 }
 0x4a5   : > { %p1849_p8 = por %p1848_p6, %p1847_p0 }
 0x4a6   : > { %p1845_p13 = pneg %p1844_p2 }
 0x4a7   : > { %p1851_p5 = por %p1850_p10, %p1849_p8 }
 0x4a9   : > { %p1852_p9 = pnand %p1851_p5, %p1845_p13 }
 0x4ab   : > { %1855 = shalt.err (!%p1852_p9)
}
 0x4ac   : > { %s1933_s4 = smov 64   ;;  %s1934_s6 = smov 4  }
 0x4ad   : > { %1479 = dma.vmem_to_hbm [thread:$0]  (%p2170_p3), %s2382_s13, 128, %s2380_s14, %s1074_s27, %s1933_s4, %s1933_s4, %s1934_s6  }
 0x4ae PF: > { %s2481_s9 = sld [smem:[#allocation23_spill]]  ;;  %s2482_s25 = sld [smem:[#allocation24_spill]] }
 0x4af   : > { %p2484_p11 = scmp.ge.s32.totalorder %s1914_s20, 2 }
 0x4b4   : > { %s1124_s2 = sand.u32 1, %s2481_s9   ;;  %p2483_p4 = scmp.ne.s32.totalorder %s2482_s25, 0 }
 0x4b5   : > { %s1125_s16 = scalar_lea.sflag [#allocation4], %s1124_s2 }
 0x4b6   : > { %p1504_p7 = pnand %p2484_p11, %p2483_p4 }
 0x4b8   : > { %1893 = dma.done.wait (!%p1504_p7), %s1125_s16, 128  }
 0x4b9   : > { %1895 = vsyncadd (!%p1504_p7), %s1125_s16, 4294967168  ;;  %s1134_s21 = scalar_lea.sflag [#allocation15], %s1124_s2 }
 0x4ba   : > { %1897 = dma.done.wait (!%p1504_p7), %s1134_s21, 256  }
 0x4bb   : > { %1899 = vsyncadd (!%p1504_p7), %s1134_s21, 4294967040  ;;  %s2485_s15 = sld [smem:[#allocation25_spill]]  ;;  %p33_p3 = scmp.ge.s32.totalorder %s2157_s28, 4  }
 0x4bc   : > { %s2486_s17 = smov %s1906_s18  ;;  %s2487_s18 = smov %s1910_s19 }
 0x4bd   : > { %s2489_s20 = smov %s2157_s28  ;;  %35 = sbr.rel (!%p33_p3) target bundleno = 18 (0x12), region = 151 }
 0x4c1   : > { %s2488_s19 = smov %s2485_s15 }
 0x4c4   :  { %1139 = vsyncpa [#allocation3], 1 }
 0x4c5   :  { %1141 = vsyncpa [#allocation3 + $0x1], 1 }
 0x4c6   :  { %1142 = vsyncpa [#allocation6], 1 }
 0x4c7   :  { %1144 = vsyncpa [#allocation6 + $0x1], 1 }
 0x4c8   :  { %1145 = vsyncpa [#allocation9], 1 }
 0x4c9   :  { %1146 = vsyncpa [#allocation12], 1 }
 0x4ca   :  { %1147 = vsyncpa [#allocation4], 1 }
 0x4cb   :  { %1149 = vsyncpa [#allocation4 + $0x1], 1 }
 0x4cc   :  { %1150 = vsyncpa [#allocation15], 1 }
 0x4cd   :  { %1152 = vsyncpa [#allocation15 + $0x1], 1 }

</bundles_post_ra>
